<compile_context>
chip_gen: v6e
topology: v6e:2x2x1
jax: 0.10.0
libtpu: 0.0.40
codegen_flags: <defaults>
</compile_context>

<pallas_src>
import jax
import jax.numpy as jnp
from jax.experimental import pallas as pl
from jax.experimental.pallas import tpu as pltpu


def _bbg_lstm_kernel(x_ref, wih_ref, whh_ref, wcomb_ref, b_ref,
                     h0_ref, c0_ref, out_ref):
    # x_ref     : (k*B, D)  bf16  time-major flattened inputs (cast in the wrapper)
    # wih_ref   : (D, 4H)   bf16  fused input->hidden weights, gate order (i, f, o, g)
    # whh_ref   : (H, 4H)   bf16  fused hidden->hidden weights
    # wcomb_ref : (H, 4H)   bf16  W_ih + W_hh (phase 2: input == previous hidden)
    # b_ref     : (1, 4H)   f32   b_ih + b_hh
    # h0 / c0   : (B, H)    f32
    # out_ref   : (B, k*H)  f32   lane-dense output slab; out[:, t*H:(t+1)*H] = t-th output
    B, H = h0_ref.shape
    k = x_ref.shape[0] // B

    whh = whh_ref[...]
    wcomb = wcomb_ref[...]
    bias = b_ref[...]

    # Hoisted off the recurrence: project every input timestep through W_ih with one
    # dense (k*B, D) @ (D, 4H) matmul and fold the bias in.  (Row k-1 is computed but
    # never consumed, matching the module which never uses batch[k-1].)
    x_proj = jnp.dot(x_ref[...], wih_ref[...],
                     preferred_element_type=jnp.float32) + bias        # (k*B, 4H) f32

    h = h0_ref[...]          # (B, H) f32, carried in vregs
    c = c0_ref[...]          # (B, H) f32, carried in vregs

    def apply_gates(pre, c_prev):
        # Gate order (i, f, o, g): one sigmoid push covers i/f/o, one tanh push covers g.
        # Gate math stays f32 (v5e has no bf16 VPU/EUP).  The 32-lane slices are cheap
        # XLU filler (2 XLU units have slack) — left alone per review.
        sig = jax.nn.sigmoid(pre)                        # full 128-lane vreg, single push
        i_g = sig[:, 0 * H:1 * H]
        f_g = sig[:, 1 * H:2 * H]
        o_g = sig[:, 2 * H:3 * H]
        g_g = jnp.tanh(pre[:, 3 * H:4 * H])
        c_new = f_g * c_prev + i_g * g_g
        h_new = o_g * jnp.tanh(c_new)
        return h_new, c_new

    # Phase 1 (teacher forced over the first k-1 inputs): only h @ W_hh sits on the
    # serial chain.  Loops are fully unrolled (static trip count).
    for step in range(k - 1):
        pre = x_proj[step * B:(step + 1) * B] + jnp.dot(
            h.astype(jnp.bfloat16), whh, preferred_element_type=jnp.float32)
        h, c = apply_gates(pre, c)
    out_ref[:, 0:H] = h

    # Phase 2 (autoregressive, k-1 steps): input == previous hidden, so the two
    # projections collapse into a single (B, H) @ (H, 4H) matmul per step.
    for step in range(k - 1):
        pre = jnp.dot(h.astype(jnp.bfloat16), wcomb,
                      preferred_element_type=jnp.float32) + bias
        h, c = apply_gates(pre, c)
        out_ref[:, (step + 1) * H:(step + 2) * H] = h


def bbg_lstm_forward(batch, w_ih, w_hh, b_ih, b_hh, h0, c0):
    """batch: (k, B, D); w_ih: (4H, D); w_hh: (4H, H); b_*: (4H,); h0/c0: (B, H).

    Returns the stacked outputs of shape (k, B, H) — the PyTorch module's list of k
    (B, H) tensors stacked along axis 0.
    """
    if batch.ndim < 3:
        raise Exception("Danger, Danger Will Robinson")
    if batch.shape[0] <= 1:
        raise Exception("ya done effed up, kid")

    k, B, D = batch.shape
    H = h0.shape[-1]
    assert D == H, "bbgLSTM uses hidden_dim == input_dim"

    # PyTorch packs gates along dim 0 in order (i, f, g, o).  Reorder to (i, f, o, g)
    # and transpose so the kernel does one 4H-lane-wide matmul per step and a single
    # sigmoid covers the contiguous i|f|o block.
    order = jnp.array([0, 1, 3, 2], dtype=jnp.int32)

    def regroup(w):   # (4H, X) -> (X, 4H), gate-major columns in order (i, f, o, g)
        wg = w.reshape(4, H, -1)[order]                       # (4, H, X)
        return jnp.transpose(wg, (2, 0, 1)).reshape(-1, 4 * H).astype(jnp.float32)

    wih_all = regroup(w_ih)                                   # (D, 4H) f32
    whh_all = regroup(w_hh)                                   # (H, 4H) f32
    bias = (b_ih + b_hh).astype(jnp.float32).reshape(4, H)[order].reshape(1, 4 * H)

    out = pl.pallas_call(
        _bbg_lstm_kernel,
        out_shape=jax.ShapeDtypeStruct((B, k * H), jnp.float32),
        in_specs=[pl.BlockSpec(memory_space=pltpu.MemorySpace.VMEM)] * 7,
        out_specs=pl.BlockSpec(memory_space=pltpu.MemorySpace.VMEM),
    )(batch.reshape(k * B, D).astype(jnp.bfloat16),     # bf16 cast in wrapper, off chain
      wih_all.astype(jnp.bfloat16),
      whh_all.astype(jnp.bfloat16),
      (wih_all + whh_all).astype(jnp.bfloat16),     # phase-2 combined weights (sum in f32)
      bias,
      h0.astype(jnp.float32),
      c0.astype(jnp.float32))

    # (B, k*H) -> (k, B, H): slot t of the lane-dense slab is the t-th output.
    return jnp.transpose(out.reshape(B, k, H), (1, 0, 2))


def _reference(batch, w_ih, w_hh, b_ih, b_hh, h0, c0):
    """Pure-JAX f32 replica of the PyTorch module forward (for tolerance checking)."""
    k = batch.shape[0]
    H = h0.shape[-1]

    def cell(x, h, c):
        gates = x @ w_ih.T + b_ih + h @ w_hh.T + b_hh          # (B, 4H), order (i, f, g, o)
        i = jax.nn.sigmoid(gates[:, 0 * H:1 * H])
        f = jax.nn.sigmoid(gates[:, 1 * H:2 * H])
        g = jnp.tanh(gates[:, 2 * H:3 * H])
        o = jax.nn.sigmoid(gates[:, 3 * H:4 * H])
        c_new = f * c + i * g
        h_new = o * jnp.tanh(c_new)
        return h_new, c_new

    h, c = h0, c0
    for step in range(k - 1):
        h, c = cell(batch[step], h, c)
    outs = [h]
    for step in range(k - 1):
        h, c = cell(h, h, c)          # output == hidden is fed back as the input
        outs.append(h)
    return jnp.stack(outs, axis=0)


if __name__ == "__main__":
    k, B, D = 8, 1, 32          # seq len, batch (must be 1 for the PyTorch code), features
    H = D                       # hidden_dim == input_dim in bbgLSTM

    key = jax.random.PRNGKey(0)
    kx, kwih, kwhh, kbih, kbhh, kh, kc = jax.random.split(key, 7)

    # nn.LSTM default init: U(-1/sqrt(H), 1/sqrt(H)) for all weights and biases.
    bound = 1.0 / jnp.sqrt(jnp.float32(H))
    w_ih = jax.random.uniform(kwih, (4 * H, D), jnp.float32, -bound, bound)
    w_hh = jax.random.uniform(kwhh, (4 * H, H), jnp.float32, -bound, bound)
    b_ih = jax.random.uniform(kbih, (4 * H,), jnp.float32, -bound, bound)
    b_hh = jax.random.uniform(kbhh, (4 * H,), jnp.float32, -bound, bound)

    batch = jax.random.normal(kx, (k, B, D), jnp.float32)
    # TODO(synk): init_hidden uses torch.randn; replaced with deterministic jax.random.normal.
    h0 = jax.random.normal(kh, (B, H), jnp.float32)
    c0 = jax.random.normal(kc, (B, H), jnp.float32)

    outputs = bbg_lstm_forward(batch, w_ih, w_hh, b_ih, b_hh, h0, c0)
    outputs = jax.block_until_ready(outputs)
    assert outputs.shape == (k, B, H)

    # bf16 matmul operands -> validate against the f32 reference with a loosened
    # tolerance (per review correctness note), not 1e-6.
    ref = jax.block_until_ready(_reference(batch, w_ih, w_hh, b_ih, b_hh, h0, c0))
    max_err = float(jnp.max(jnp.abs(outputs - ref)))
    assert max_err < 5e-2, f"kernel diverged from f32 reference: max_err={max_err}"

    print("KERNEL_OK")
</pallas_src>

<mosaic_0001>
module attributes {stable_mosaic.version = 11 : i64} {
  func.func @_bbg_lstm_kernel(%arg0: memref<8x32xbf16, #tpu.memory_space<vmem>>, %arg1: memref<32x128xbf16, #tpu.memory_space<vmem>>, %arg2: memref<32x128xbf16, #tpu.memory_space<vmem>>, %arg3: memref<32x128xbf16, #tpu.memory_space<vmem>>, %arg4: memref<1x128xf32, #tpu.memory_space<vmem>>, %arg5: memref<1x32xf32, #tpu.memory_space<vmem>>, %arg6: memref<1x32xf32, #tpu.memory_space<vmem>>, %arg7: memref<1x256xf32, #tpu.memory_space<vmem>>) attributes {dimension_semantics = [], scalar_prefetch = 0 : i64, scratch_operands = 0 : i64, tpu.core_type = #tpu.core_type<tc>} {
    %c0 = arith.constant 0 : index
    %c0_0 = arith.constant 0 : index
    %0 = vector.load %arg2[%c0, %c0_0] : memref<32x128xbf16, #tpu.memory_space<vmem>>, vector<32x128xbf16>
    %c0_1 = arith.constant 0 : index
    %c0_2 = arith.constant 0 : index
    %1 = vector.load %arg3[%c0_1, %c0_2] : memref<32x128xbf16, #tpu.memory_space<vmem>>, vector<32x128xbf16>
    %c0_3 = arith.constant 0 : index
    %c0_4 = arith.constant 0 : index
    %2 = vector.load %arg4[%c0_3, %c0_4] : memref<1x128xf32, #tpu.memory_space<vmem>>, vector<1x128xf32>
    %c0_5 = arith.constant 0 : index
    %c0_6 = arith.constant 0 : index
    %3 = vector.load %arg0[%c0_5, %c0_6] : memref<8x32xbf16, #tpu.memory_space<vmem>>, vector<8x32xbf16>
    %c0_7 = arith.constant 0 : index
    %c0_8 = arith.constant 0 : index
    %4 = vector.load %arg1[%c0_7, %c0_8] : memref<32x128xbf16, #tpu.memory_space<vmem>>, vector<32x128xbf16>
    %cst = arith.constant dense<0.000000e+00> : vector<8x128xf32>
    %5 = tpu.matmul %3, %4, %cst {dimension_numbers = #tpu.dot_dimension_numbers<[1], [0], [0], [1], [0, 0, 1, 1], [], []>} : vector<8x32xbf16>, vector<32x128xbf16>, vector<8x128xf32> -> vector<8x128xf32>
    %6 = vector.broadcast %2 : vector<1x128xf32> to vector<8x128xf32>
    %7 = arith.addf %5, %6 : vector<8x128xf32>
    %c0_9 = arith.constant 0 : index
    %c0_10 = arith.constant 0 : index
    %8 = vector.load %arg5[%c0_9, %c0_10] : memref<1x32xf32, #tpu.memory_space<vmem>>, vector<1x32xf32>
    %c0_11 = arith.constant 0 : index
    %c0_12 = arith.constant 0 : index
    %9 = vector.load %arg6[%c0_11, %c0_12] : memref<1x32xf32, #tpu.memory_space<vmem>>, vector<1x32xf32>
    %10 = vector.extract_strided_slice %7 {offsets = [0, 0], sizes = [1, 128], strides = [1, 1]} : vector<8x128xf32> to vector<1x128xf32>
    %11 = arith.truncf %8 : vector<1x32xf32> to vector<1x32xbf16>
    %cst_13 = arith.constant dense<0.000000e+00> : vector<1x128xf32>
    %12 = tpu.matmul %11, %0, %cst_13 {dimension_numbers = #tpu.dot_dimension_numbers<[1], [0], [0], [1], [0, 0, 1, 1], [], []>} : vector<1x32xbf16>, vector<32x128xbf16>, vector<1x128xf32> -> vector<1x128xf32>
    %13 = arith.addf %10, %12 : vector<1x128xf32>
    %14 = arith.negf %13 : vector<1x128xf32>
    %15 = math.exp %14 : vector<1x128xf32>
    %cst_14 = arith.constant 1.000000e+00 : f32
    %16 = vector.broadcast %cst_14 : f32 to vector<1x128xf32>
    %17 = arith.addf %16, %15 : vector<1x128xf32>
    %18 = arith.divf %16, %17 : vector<1x128xf32>
    %19 = vector.extract_strided_slice %18 {offsets = [0, 0], sizes = [1, 32], strides = [1, 1]} : vector<1x128xf32> to vector<1x32xf32>
    %20 = vector.extract_strided_slice %18 {offsets = [0, 32], sizes = [1, 32], strides = [1, 1]} : vector<1x128xf32> to vector<1x32xf32>
    %21 = vector.extract_strided_slice %18 {offsets = [0, 64], sizes = [1, 32], strides = [1, 1]} : vector<1x128xf32> to vector<1x32xf32>
    %22 = vector.extract_strided_slice %13 {offsets = [0, 96], sizes = [1, 32], strides = [1, 1]} : vector<1x128xf32> to vector<1x32xf32>
    %23 = math.tanh %22 : vector<1x32xf32>
    %24 = arith.mulf %20, %9 : vector<1x32xf32>
    %25 = arith.mulf %19, %23 : vector<1x32xf32>
    %26 = arith.addf %24, %25 : vector<1x32xf32>
    %27 = math.tanh %26 : vector<1x32xf32>
    %28 = arith.mulf %21, %27 : vector<1x32xf32>
    %29 = vector.extract_strided_slice %7 {offsets = [1, 0], sizes = [1, 128], strides = [1, 1]} : vector<8x128xf32> to vector<1x128xf32>
    %30 = arith.truncf %28 : vector<1x32xf32> to vector<1x32xbf16>
    %cst_15 = arith.constant dense<0.000000e+00> : vector<1x128xf32>
    %31 = tpu.matmul %30, %0, %cst_15 {dimension_numbers = #tpu.dot_dimension_numbers<[1], [0], [0], [1], [0, 0, 1, 1], [], []>} : vector<1x32xbf16>, vector<32x128xbf16>, vector<1x128xf32> -> vector<1x128xf32>
    %32 = arith.addf %29, %31 : vector<1x128xf32>
    %33 = arith.negf %32 : vector<1x128xf32>
    %34 = math.exp %33 : vector<1x128xf32>
    %cst_16 = arith.constant 1.000000e+00 : f32
    %35 = vector.broadcast %cst_16 : f32 to vector<1x128xf32>
    %36 = arith.addf %35, %34 : vector<1x128xf32>
    %37 = arith.divf %35, %36 : vector<1x128xf32>
    %38 = vector.extract_strided_slice %37 {offsets = [0, 0], sizes = [1, 32], strides = [1, 1]} : vector<1x128xf32> to vector<1x32xf32>
    %39 = vector.extract_strided_slice %37 {offsets = [0, 32], sizes = [1, 32], strides = [1, 1]} : vector<1x128xf32> to vector<1x32xf32>
    %40 = vector.extract_strided_slice %37 {offsets = [0, 64], sizes = [1, 32], strides = [1, 1]} : vector<1x128xf32> to vector<1x32xf32>
    %41 = vector.extract_strided_slice %32 {offsets = [0, 96], sizes = [1, 32], strides = [1, 1]} : vector<1x128xf32> to vector<1x32xf32>
    %42 = math.tanh %41 : vector<1x32xf32>
    %43 = arith.mulf %39, %26 : vector<1x32xf32>
    %44 = arith.mulf %38, %42 : vector<1x32xf32>
    %45 = arith.addf %43, %44 : vector<1x32xf32>
    %46 = math.tanh %45 : vector<1x32xf32>
    %47 = arith.mulf %40, %46 : vector<1x32xf32>
    %48 = vector.extract_strided_slice %7 {offsets = [2, 0], sizes = [1, 128], strides = [1, 1]} : vector<8x128xf32> to vector<1x128xf32>
    %49 = arith.truncf %47 : vector<1x32xf32> to vector<1x32xbf16>
    %cst_17 = arith.constant dense<0.000000e+00> : vector<1x128xf32>
    %50 = tpu.matmul %49, %0, %cst_17 {dimension_numbers = #tpu.dot_dimension_numbers<[1], [0], [0], [1], [0, 0, 1, 1], [], []>} : vector<1x32xbf16>, vector<32x128xbf16>, vector<1x128xf32> -> vector<1x128xf32>
    %51 = arith.addf %48, %50 : vector<1x128xf32>
    %52 = arith.negf %51 : vector<1x128xf32>
    %53 = math.exp %52 : vector<1x128xf32>
    %cst_18 = arith.constant 1.000000e+00 : f32
    %54 = vector.broadcast %cst_18 : f32 to vector<1x128xf32>
    %55 = arith.addf %54, %53 : vector<1x128xf32>
    %56 = arith.divf %54, %55 : vector<1x128xf32>
    %57 = vector.extract_strided_slice %56 {offsets = [0, 0], sizes = [1, 32], strides = [1, 1]} : vector<1x128xf32> to vector<1x32xf32>
    %58 = vector.extract_strided_slice %56 {offsets = [0, 32], sizes = [1, 32], strides = [1, 1]} : vector<1x128xf32> to vector<1x32xf32>
    %59 = vector.extract_strided_slice %56 {offsets = [0, 64], sizes = [1, 32], strides = [1, 1]} : vector<1x128xf32> to vector<1x32xf32>
    %60 = vector.extract_strided_slice %51 {offsets = [0, 96], sizes = [1, 32], strides = [1, 1]} : vector<1x128xf32> to vector<1x32xf32>
    %61 = math.tanh %60 : vector<1x32xf32>
    %62 = arith.mulf %58, %45 : vector<1x32xf32>
    %63 = arith.mulf %57, %61 : vector<1x32xf32>
    %64 = arith.addf %62, %63 : vector<1x32xf32>
    %65 = math.tanh %64 : vector<1x32xf32>
    %66 = arith.mulf %59, %65 : vector<1x32xf32>
    %67 = vector.extract_strided_slice %7 {offsets = [3, 0], sizes = [1, 128], strides = [1, 1]} : vector<8x128xf32> to vector<1x128xf32>
    %68 = arith.truncf %66 : vector<1x32xf32> to vector<1x32xbf16>
    %cst_19 = arith.constant dense<0.000000e+00> : vector<1x128xf32>
    %69 = tpu.matmul %68, %0, %cst_19 {dimension_numbers = #tpu.dot_dimension_numbers<[1], [0], [0], [1], [0, 0, 1, 1], [], []>} : vector<1x32xbf16>, vector<32x128xbf16>, vector<1x128xf32> -> vector<1x128xf32>
    %70 = arith.addf %67, %69 : vector<1x128xf32>
    %71 = arith.negf %70 : vector<1x128xf32>
    %72 = math.exp %71 : vector<1x128xf32>
    %cst_20 = arith.constant 1.000000e+00 : f32
    %73 = vector.broadcast %cst_20 : f32 to vector<1x128xf32>
    %74 = arith.addf %73, %72 : vector<1x128xf32>
    %75 = arith.divf %73, %74 : vector<1x128xf32>
    %76 = vector.extract_strided_slice %75 {offsets = [0, 0], sizes = [1, 32], strides = [1, 1]} : vector<1x128xf32> to vector<1x32xf32>
    %77 = vector.extract_strided_slice %75 {offsets = [0, 32], sizes = [1, 32], strides = [1, 1]} : vector<1x128xf32> to vector<1x32xf32>
    %78 = vector.extract_strided_slice %75 {offsets = [0, 64], sizes = [1, 32], strides = [1, 1]} : vector<1x128xf32> to vector<1x32xf32>
    %79 = vector.extract_strided_slice %70 {offsets = [0, 96], sizes = [1, 32], strides = [1, 1]} : vector<1x128xf32> to vector<1x32xf32>
    %80 = math.tanh %79 : vector<1x32xf32>
    %81 = arith.mulf %77, %64 : vector<1x32xf32>
    %82 = arith.mulf %76, %80 : vector<1x32xf32>
    %83 = arith.addf %81, %82 : vector<1x32xf32>
    %84 = math.tanh %83 : vector<1x32xf32>
    %85 = arith.mulf %78, %84 : vector<1x32xf32>
    %86 = vector.extract_strided_slice %7 {offsets = [4, 0], sizes = [1, 128], strides = [1, 1]} : vector<8x128xf32> to vector<1x128xf32>
    %87 = arith.truncf %85 : vector<1x32xf32> to vector<1x32xbf16>
    %cst_21 = arith.constant dense<0.000000e+00> : vector<1x128xf32>
    %88 = tpu.matmul %87, %0, %cst_21 {dimension_numbers = #tpu.dot_dimension_numbers<[1], [0], [0], [1], [0, 0, 1, 1], [], []>} : vector<1x32xbf16>, vector<32x128xbf16>, vector<1x128xf32> -> vector<1x128xf32>
    %89 = arith.addf %86, %88 : vector<1x128xf32>
    %90 = arith.negf %89 : vector<1x128xf32>
    %91 = math.exp %90 : vector<1x128xf32>
    %cst_22 = arith.constant 1.000000e+00 : f32
    %92 = vector.broadcast %cst_22 : f32 to vector<1x128xf32>
    %93 = arith.addf %92, %91 : vector<1x128xf32>
    %94 = arith.divf %92, %93 : vector<1x128xf32>
    %95 = vector.extract_strided_slice %94 {offsets = [0, 0], sizes = [1, 32], strides = [1, 1]} : vector<1x128xf32> to vector<1x32xf32>
    %96 = vector.extract_strided_slice %94 {offsets = [0, 32], sizes = [1, 32], strides = [1, 1]} : vector<1x128xf32> to vector<1x32xf32>
    %97 = vector.extract_strided_slice %94 {offsets = [0, 64], sizes = [1, 32], strides = [1, 1]} : vector<1x128xf32> to vector<1x32xf32>
    %98 = vector.extract_strided_slice %89 {offsets = [0, 96], sizes = [1, 32], strides = [1, 1]} : vector<1x128xf32> to vector<1x32xf32>
    %99 = math.tanh %98 : vector<1x32xf32>
    %100 = arith.mulf %96, %83 : vector<1x32xf32>
    %101 = arith.mulf %95, %99 : vector<1x32xf32>
    %102 = arith.addf %100, %101 : vector<1x32xf32>
    %103 = math.tanh %102 : vector<1x32xf32>
    %104 = arith.mulf %97, %103 : vector<1x32xf32>
    %105 = vector.extract_strided_slice %7 {offsets = [5, 0], sizes = [1, 128], strides = [1, 1]} : vector<8x128xf32> to vector<1x128xf32>
    %106 = arith.truncf %104 : vector<1x32xf32> to vector<1x32xbf16>
    %cst_23 = arith.constant dense<0.000000e+00> : vector<1x128xf32>
    %107 = tpu.matmul %106, %0, %cst_23 {dimension_numbers = #tpu.dot_dimension_numbers<[1], [0], [0], [1], [0, 0, 1, 1], [], []>} : vector<1x32xbf16>, vector<32x128xbf16>, vector<1x128xf32> -> vector<1x128xf32>
    %108 = arith.addf %105, %107 : vector<1x128xf32>
    %109 = arith.negf %108 : vector<1x128xf32>
    %110 = math.exp %109 : vector<1x128xf32>
    %cst_24 = arith.constant 1.000000e+00 : f32
    %111 = vector.broadcast %cst_24 : f32 to vector<1x128xf32>
    %112 = arith.addf %111, %110 : vector<1x128xf32>
    %113 = arith.divf %111, %112 : vector<1x128xf32>
    %114 = vector.extract_strided_slice %113 {offsets = [0, 0], sizes = [1, 32], strides = [1, 1]} : vector<1x128xf32> to vector<1x32xf32>
    %115 = vector.extract_strided_slice %113 {offsets = [0, 32], sizes = [1, 32], strides = [1, 1]} : vector<1x128xf32> to vector<1x32xf32>
    %116 = vector.extract_strided_slice %113 {offsets = [0, 64], sizes = [1, 32], strides = [1, 1]} : vector<1x128xf32> to vector<1x32xf32>
    %117 = vector.extract_strided_slice %108 {offsets = [0, 96], sizes = [1, 32], strides = [1, 1]} : vector<1x128xf32> to vector<1x32xf32>
    %118 = math.tanh %117 : vector<1x32xf32>
    %119 = arith.mulf %115, %102 : vector<1x32xf32>
    %120 = arith.mulf %114, %118 : vector<1x32xf32>
    %121 = arith.addf %119, %120 : vector<1x32xf32>
    %122 = math.tanh %121 : vector<1x32xf32>
    %123 = arith.mulf %116, %122 : vector<1x32xf32>
    %124 = vector.extract_strided_slice %7 {offsets = [6, 0], sizes = [1, 128], strides = [1, 1]} : vector<8x128xf32> to vector<1x128xf32>
    %125 = arith.truncf %123 : vector<1x32xf32> to vector<1x32xbf16>
    %cst_25 = arith.constant dense<0.000000e+00> : vector<1x128xf32>
    %126 = tpu.matmul %125, %0, %cst_25 {dimension_numbers = #tpu.dot_dimension_numbers<[1], [0], [0], [1], [0, 0, 1, 1], [], []>} : vector<1x32xbf16>, vector<32x128xbf16>, vector<1x128xf32> -> vector<1x128xf32>
    %127 = arith.addf %124, %126 : vector<1x128xf32>
    %128 = arith.negf %127 : vector<1x128xf32>
    %129 = math.exp %128 : vector<1x128xf32>
    %cst_26 = arith.constant 1.000000e+00 : f32
    %130 = vector.broadcast %cst_26 : f32 to vector<1x128xf32>
    %131 = arith.addf %130, %129 : vector<1x128xf32>
    %132 = arith.divf %130, %131 : vector<1x128xf32>
    %133 = vector.extract_strided_slice %132 {offsets = [0, 0], sizes = [1, 32], strides = [1, 1]} : vector<1x128xf32> to vector<1x32xf32>
    %134 = vector.extract_strided_slice %132 {offsets = [0, 32], sizes = [1, 32], strides = [1, 1]} : vector<1x128xf32> to vector<1x32xf32>
    %135 = vector.extract_strided_slice %132 {offsets = [0, 64], sizes = [1, 32], strides = [1, 1]} : vector<1x128xf32> to vector<1x32xf32>
    %136 = vector.extract_strided_slice %127 {offsets = [0, 96], sizes = [1, 32], strides = [1, 1]} : vector<1x128xf32> to vector<1x32xf32>
    %137 = math.tanh %136 : vector<1x32xf32>
    %138 = arith.mulf %134, %121 : vector<1x32xf32>
    %139 = arith.mulf %133, %137 : vector<1x32xf32>
    %140 = arith.addf %138, %139 : vector<1x32xf32>
    %141 = math.tanh %140 : vector<1x32xf32>
    %142 = arith.mulf %135, %141 : vector<1x32xf32>
    %c0_27 = arith.constant 0 : index
    %c0_28 = arith.constant 0 : index
    %143 = vector.load %arg7[%c0_27, %c0_28] : memref<1x256xf32, #tpu.memory_space<vmem>>, vector<1x32xf32>
    tpu.vector_store %arg7[%c0_27, %c0_28], %142 {strides = array<i32>} : memref<1x256xf32, #tpu.memory_space<vmem>>, vector<1x32xf32>,
    %144 = arith.truncf %142 : vector<1x32xf32> to vector<1x32xbf16>
    %cst_29 = arith.constant dense<0.000000e+00> : vector<1x128xf32>
    %145 = tpu.matmul %144, %1, %cst_29 {dimension_numbers = #tpu.dot_dimension_numbers<[1], [0], [0], [1], [0, 0, 1, 1], [], []>} : vector<1x32xbf16>, vector<32x128xbf16>, vector<1x128xf32> -> vector<1x128xf32>
    %146 = arith.addf %145, %2 : vector<1x128xf32>
    %147 = arith.negf %146 : vector<1x128xf32>
    %148 = math.exp %147 : vector<1x128xf32>
    %cst_30 = arith.constant 1.000000e+00 : f32
    %149 = vector.broadcast %cst_30 : f32 to vector<1x128xf32>
    %150 = arith.addf %149, %148 : vector<1x128xf32>
    %151 = arith.divf %149, %150 : vector<1x128xf32>
    %152 = vector.extract_strided_slice %151 {offsets = [0, 0], sizes = [1, 32], strides = [1, 1]} : vector<1x128xf32> to vector<1x32xf32>
    %153 = vector.extract_strided_slice %151 {offsets = [0, 32], sizes = [1, 32], strides = [1, 1]} : vector<1x128xf32> to vector<1x32xf32>
    %154 = vector.extract_strided_slice %151 {offsets = [0, 64], sizes = [1, 32], strides = [1, 1]} : vector<1x128xf32> to vector<1x32xf32>
    %155 = vector.extract_strided_slice %146 {offsets = [0, 96], sizes = [1, 32], strides = [1, 1]} : vector<1x128xf32> to vector<1x32xf32>
    %156 = math.tanh %155 : vector<1x32xf32>
    %157 = arith.mulf %153, %140 : vector<1x32xf32>
    %158 = arith.mulf %152, %156 : vector<1x32xf32>
    %159 = arith.addf %157, %158 : vector<1x32xf32>
    %160 = math.tanh %159 : vector<1x32xf32>
    %161 = arith.mulf %154, %160 : vector<1x32xf32>
    %c0_31 = arith.constant 0 : index
    %c32 = arith.constant 32 : index
    %162 = vector.load %arg7[%c0_31, %c32] : memref<1x256xf32, #tpu.memory_space<vmem>>, vector<1x32xf32>
    tpu.vector_store %arg7[%c0_31, %c32], %161 {strides = array<i32>} : memref<1x256xf32, #tpu.memory_space<vmem>>, vector<1x32xf32>,
    %163 = arith.truncf %161 : vector<1x32xf32> to vector<1x32xbf16>
    %cst_32 = arith.constant dense<0.000000e+00> : vector<1x128xf32>
    %164 = tpu.matmul %163, %1, %cst_32 {dimension_numbers = #tpu.dot_dimension_numbers<[1], [0], [0], [1], [0, 0, 1, 1], [], []>} : vector<1x32xbf16>, vector<32x128xbf16>, vector<1x128xf32> -> vector<1x128xf32>
    %165 = arith.addf %164, %2 : vector<1x128xf32>
    %166 = arith.negf %165 : vector<1x128xf32>
    %167 = math.exp %166 : vector<1x128xf32>
    %cst_33 = arith.constant 1.000000e+00 : f32
    %168 = vector.broadcast %cst_33 : f32 to vector<1x128xf32>
    %169 = arith.addf %168, %167 : vector<1x128xf32>
    %170 = arith.divf %168, %169 : vector<1x128xf32>
    %171 = vector.extract_strided_slice %170 {offsets = [0, 0], sizes = [1, 32], strides = [1, 1]} : vector<1x128xf32> to vector<1x32xf32>
    %172 = vector.extract_strided_slice %170 {offsets = [0, 32], sizes = [1, 32], strides = [1, 1]} : vector<1x128xf32> to vector<1x32xf32>
    %173 = vector.extract_strided_slice %170 {offsets = [0, 64], sizes = [1, 32], strides = [1, 1]} : vector<1x128xf32> to vector<1x32xf32>
    %174 = vector.extract_strided_slice %165 {offsets = [0, 96], sizes = [1, 32], strides = [1, 1]} : vector<1x128xf32> to vector<1x32xf32>
    %175 = math.tanh %174 : vector<1x32xf32>
    %176 = arith.mulf %172, %159 : vector<1x32xf32>
    %177 = arith.mulf %171, %175 : vector<1x32xf32>
    %178 = arith.addf %176, %177 : vector<1x32xf32>
    %179 = math.tanh %178 : vector<1x32xf32>
    %180 = arith.mulf %173, %179 : vector<1x32xf32>
    %c0_34 = arith.constant 0 : index
    %c64 = arith.constant 64 : index
    %181 = vector.load %arg7[%c0_34, %c64] : memref<1x256xf32, #tpu.memory_space<vmem>>, vector<1x32xf32>
    tpu.vector_store %arg7[%c0_34, %c64], %180 {strides = array<i32>} : memref<1x256xf32, #tpu.memory_space<vmem>>, vector<1x32xf32>,
    %182 = arith.truncf %180 : vector<1x32xf32> to vector<1x32xbf16>
    %cst_35 = arith.constant dense<0.000000e+00> : vector<1x128xf32>
    %183 = tpu.matmul %182, %1, %cst_35 {dimension_numbers = #tpu.dot_dimension_numbers<[1], [0], [0], [1], [0, 0, 1, 1], [], []>} : vector<1x32xbf16>, vector<32x128xbf16>, vector<1x128xf32> -> vector<1x128xf32>
    %184 = arith.addf %183, %2 : vector<1x128xf32>
    %185 = arith.negf %184 : vector<1x128xf32>
    %186 = math.exp %185 : vector<1x128xf32>
    %cst_36 = arith.constant 1.000000e+00 : f32
    %187 = vector.broadcast %cst_36 : f32 to vector<1x128xf32>
    %188 = arith.addf %187, %186 : vector<1x128xf32>
    %189 = arith.divf %187, %188 : vector<1x128xf32>
    %190 = vector.extract_strided_slice %189 {offsets = [0, 0], sizes = [1, 32], strides = [1, 1]} : vector<1x128xf32> to vector<1x32xf32>
    %191 = vector.extract_strided_slice %189 {offsets = [0, 32], sizes = [1, 32], strides = [1, 1]} : vector<1x128xf32> to vector<1x32xf32>
    %192 = vector.extract_strided_slice %189 {offsets = [0, 64], sizes = [1, 32], strides = [1, 1]} : vector<1x128xf32> to vector<1x32xf32>
    %193 = vector.extract_strided_slice %184 {offsets = [0, 96], sizes = [1, 32], strides = [1, 1]} : vector<1x128xf32> to vector<1x32xf32>
    %194 = math.tanh %193 : vector<1x32xf32>
    %195 = arith.mulf %191, %178 : vector<1x32xf32>
    %196 = arith.mulf %190, %194 : vector<1x32xf32>
    %197 = arith.addf %195, %196 : vector<1x32xf32>
    %198 = math.tanh %197 : vector<1x32xf32>
    %199 = arith.mulf %192, %198 : vector<1x32xf32>
    %c0_37 = arith.constant 0 : index
    %c96 = arith.constant 96 : index
    %200 = vector.load %arg7[%c0_37, %c96] : memref<1x256xf32, #tpu.memory_space<vmem>>, vector<1x32xf32>
    tpu.vector_store %arg7[%c0_37, %c96], %199 {strides = array<i32>} : memref<1x256xf32, #tpu.memory_space<vmem>>, vector<1x32xf32>,
    %201 = arith.truncf %199 : vector<1x32xf32> to vector<1x32xbf16>
    %cst_38 = arith.constant dense<0.000000e+00> : vector<1x128xf32>
    %202 = tpu.matmul %201, %1, %cst_38 {dimension_numbers = #tpu.dot_dimension_numbers<[1], [0], [0], [1], [0, 0, 1, 1], [], []>} : vector<1x32xbf16>, vector<32x128xbf16>, vector<1x128xf32> -> vector<1x128xf32>
    %203 = arith.addf %202, %2 : vector<1x128xf32>
    %204 = arith.negf %203 : vector<1x128xf32>
    %205 = math.exp %204 : vector<1x128xf32>
    %cst_39 = arith.constant 1.000000e+00 : f32
    %206 = vector.broadcast %cst_39 : f32 to vector<1x128xf32>
    %207 = arith.addf %206, %205 : vector<1x128xf32>
    %208 = arith.divf %206, %207 : vector<1x128xf32>
    %209 = vector.extract_strided_slice %208 {offsets = [0, 0], sizes = [1, 32], strides = [1, 1]} : vector<1x128xf32> to vector<1x32xf32>
    %210 = vector.extract_strided_slice %208 {offsets = [0, 32], sizes = [1, 32], strides = [1, 1]} : vector<1x128xf32> to vector<1x32xf32>
    %211 = vector.extract_strided_slice %208 {offsets = [0, 64], sizes = [1, 32], strides = [1, 1]} : vector<1x128xf32> to vector<1x32xf32>
    %212 = vector.extract_strided_slice %203 {offsets = [0, 96], sizes = [1, 32], strides = [1, 1]} : vector<1x128xf32> to vector<1x32xf32>
    %213 = math.tanh %212 : vector<1x32xf32>
    %214 = arith.mulf %210, %197 : vector<1x32xf32>
    %215 = arith.mulf %209, %213 : vector<1x32xf32>
    %216 = arith.addf %214, %215 : vector<1x32xf32>
    %217 = math.tanh %216 : vector<1x32xf32>
    %218 = arith.mulf %211, %217 : vector<1x32xf32>
    %c0_40 = arith.constant 0 : index
    %c128 = arith.constant 128 : index
    %219 = vector.load %arg7[%c0_40, %c128] : memref<1x256xf32, #tpu.memory_space<vmem>>, vector<1x32xf32>
    tpu.vector_store %arg7[%c0_40, %c128], %218 {strides = array<i32>} : memref<1x256xf32, #tpu.memory_space<vmem>>, vector<1x32xf32>,
    %220 = arith.truncf %218 : vector<1x32xf32> to vector<1x32xbf16>
    %cst_41 = arith.constant dense<0.000000e+00> : vector<1x128xf32>
    %221 = tpu.matmul %220, %1, %cst_41 {dimension_numbers = #tpu.dot_dimension_numbers<[1], [0], [0], [1], [0, 0, 1, 1], [], []>} : vector<1x32xbf16>, vector<32x128xbf16>, vector<1x128xf32> -> vector<1x128xf32>
    %222 = arith.addf %221, %2 : vector<1x128xf32>
    %223 = arith.negf %222 : vector<1x128xf32>
    %224 = math.exp %223 : vector<1x128xf32>
    %cst_42 = arith.constant 1.000000e+00 : f32
    %225 = vector.broadcast %cst_42 : f32 to vector<1x128xf32>
    %226 = arith.addf %225, %224 : vector<1x128xf32>
    %227 = arith.divf %225, %226 : vector<1x128xf32>
    %228 = vector.extract_strided_slice %227 {offsets = [0, 0], sizes = [1, 32], strides = [1, 1]} : vector<1x128xf32> to vector<1x32xf32>
    %229 = vector.extract_strided_slice %227 {offsets = [0, 32], sizes = [1, 32], strides = [1, 1]} : vector<1x128xf32> to vector<1x32xf32>
    %230 = vector.extract_strided_slice %227 {offsets = [0, 64], sizes = [1, 32], strides = [1, 1]} : vector<1x128xf32> to vector<1x32xf32>
    %231 = vector.extract_strided_slice %222 {offsets = [0, 96], sizes = [1, 32], strides = [1, 1]} : vector<1x128xf32> to vector<1x32xf32>
    %232 = math.tanh %231 : vector<1x32xf32>
    %233 = arith.mulf %229, %216 : vector<1x32xf32>
    %234 = arith.mulf %228, %232 : vector<1x32xf32>
    %235 = arith.addf %233, %234 : vector<1x32xf32>
    %236 = math.tanh %235 : vector<1x32xf32>
    %237 = arith.mulf %230, %236 : vector<1x32xf32>
    %c0_43 = arith.constant 0 : index
    %c160 = arith.constant 160 : index
    %238 = vector.load %arg7[%c0_43, %c160] : memref<1x256xf32, #tpu.memory_space<vmem>>, vector<1x32xf32>
    tpu.vector_store %arg7[%c0_43, %c160], %237 {strides = array<i32>} : memref<1x256xf32, #tpu.memory_space<vmem>>, vector<1x32xf32>,
    %239 = arith.truncf %237 : vector<1x32xf32> to vector<1x32xbf16>
    %cst_44 = arith.constant dense<0.000000e+00> : vector<1x128xf32>
    %240 = tpu.matmul %239, %1, %cst_44 {dimension_numbers = #tpu.dot_dimension_numbers<[1], [0], [0], [1], [0, 0, 1, 1], [], []>} : vector<1x32xbf16>, vector<32x128xbf16>, vector<1x128xf32> -> vector<1x128xf32>
    %241 = arith.addf %240, %2 : vector<1x128xf32>
    %242 = arith.negf %241 : vector<1x128xf32>
    %243 = math.exp %242 : vector<1x128xf32>
    %cst_45 = arith.constant 1.000000e+00 : f32
    %244 = vector.broadcast %cst_45 : f32 to vector<1x128xf32>
    %245 = arith.addf %244, %243 : vector<1x128xf32>
    %246 = arith.divf %244, %245 : vector<1x128xf32>
    %247 = vector.extract_strided_slice %246 {offsets = [0, 0], sizes = [1, 32], strides = [1, 1]} : vector<1x128xf32> to vector<1x32xf32>
    %248 = vector.extract_strided_slice %246 {offsets = [0, 32], sizes = [1, 32], strides = [1, 1]} : vector<1x128xf32> to vector<1x32xf32>
    %249 = vector.extract_strided_slice %246 {offsets = [0, 64], sizes = [1, 32], strides = [1, 1]} : vector<1x128xf32> to vector<1x32xf32>
    %250 = vector.extract_strided_slice %241 {offsets = [0, 96], sizes = [1, 32], strides = [1, 1]} : vector<1x128xf32> to vector<1x32xf32>
    %251 = math.tanh %250 : vector<1x32xf32>
    %252 = arith.mulf %248, %235 : vector<1x32xf32>
    %253 = arith.mulf %247, %251 : vector<1x32xf32>
    %254 = arith.addf %252, %253 : vector<1x32xf32>
    %255 = math.tanh %254 : vector<1x32xf32>
    %256 = arith.mulf %249, %255 : vector<1x32xf32>
    %c0_46 = arith.constant 0 : index
    %c192 = arith.constant 192 : index
    %257 = vector.load %arg7[%c0_46, %c192] : memref<1x256xf32, #tpu.memory_space<vmem>>, vector<1x32xf32>
    tpu.vector_store %arg7[%c0_46, %c192], %256 {strides = array<i32>} : memref<1x256xf32, #tpu.memory_space<vmem>>, vector<1x32xf32>,
    %258 = arith.truncf %256 : vector<1x32xf32> to vector<1x32xbf16>
    %cst_47 = arith.constant dense<0.000000e+00> : vector<1x128xf32>
    %259 = tpu.matmul %258, %1, %cst_47 {dimension_numbers = #tpu.dot_dimension_numbers<[1], [0], [0], [1], [0, 0, 1, 1], [], []>} : vector<1x32xbf16>, vector<32x128xbf16>, vector<1x128xf32> -> vector<1x128xf32>
    %260 = arith.addf %259, %2 : vector<1x128xf32>
    %261 = arith.negf %260 : vector<1x128xf32>
    %262 = math.exp %261 : vector<1x128xf32>
    %cst_48 = arith.constant 1.000000e+00 : f32
    %263 = vector.broadcast %cst_48 : f32 to vector<1x128xf32>
    %264 = arith.addf %263, %262 : vector<1x128xf32>
    %265 = arith.divf %263, %264 : vector<1x128xf32>
    %266 = vector.extract_strided_slice %265 {offsets = [0, 0], sizes = [1, 32], strides = [1, 1]} : vector<1x128xf32> to vector<1x32xf32>
    %267 = vector.extract_strided_slice %265 {offsets = [0, 32], sizes = [1, 32], strides = [1, 1]} : vector<1x128xf32> to vector<1x32xf32>
    %268 = vector.extract_strided_slice %265 {offsets = [0, 64], sizes = [1, 32], strides = [1, 1]} : vector<1x128xf32> to vector<1x32xf32>
    %269 = vector.extract_strided_slice %260 {offsets = [0, 96], sizes = [1, 32], strides = [1, 1]} : vector<1x128xf32> to vector<1x32xf32>
    %270 = math.tanh %269 : vector<1x32xf32>
    %271 = arith.mulf %267, %254 : vector<1x32xf32>
    %272 = arith.mulf %266, %270 : vector<1x32xf32>
    %273 = arith.addf %271, %272 : vector<1x32xf32>
    %274 = math.tanh %273 : vector<1x32xf32>
    %275 = arith.mulf %268, %274 : vector<1x32xf32>
    %c0_49 = arith.constant 0 : index
    %c224 = arith.constant 224 : index
    %276 = vector.load %arg7[%c0_49, %c224] : memref<1x256xf32, #tpu.memory_space<vmem>>, vector<1x32xf32>
    tpu.vector_store %arg7[%c0_49, %c224], %275 {strides = array<i32>} : memref<1x256xf32, #tpu.memory_space<vmem>>, vector<1x32xf32>,
    return
  }
}

</mosaic_0001>

<bundles_post_ra>
// kernel: tpu_custom_call.1
= control target key start
LH: loop header
LB: loop body
LE: loop exit
PB: predicated region body
PF: predicated region fallthrough
CT: control target
= control target key end

     0   :  { %12 = vsyncpa [#allocation3], 0  ;;  %s2225_s0 = inlined_call_operand.hbm [shape: bf16[8,32], index: 0, kind: input, shape index: {}]   ;;  %s2226_s1 = inlined_call_operand.hbm [shape: bf16[32,128], index: 1, kind: input, shape index: {}]   ;;  %s2227_s2 = inlined_call_operand.hbm [shape: bf16[32,128], index: 2, kind: input, shape index: {}]   ;;  %s2228_s3 = inlined_call_operand.hbm [shape: bf16[32,128], index: 3, kind: input, shape index: {}]   ;;  %s2229_s4 = inlined_call_operand.vmem [shape: f32[1,128], index: 4, kind: input, shape index: {}]   ;;  %s2230_s5 = inlined_call_operand.vmem [shape: f32[1,32], index: 5, kind: input, shape index: {}]   ;;  %s2231_s6 = inlined_call_operand.vmem [shape: f32[1,32], index: 6, kind: input, shape index: {}]   ;;  %s2232_s7 = inlined_call_operand.hbm [shape: f32[1,256], index: 7, kind: output, shape index: {}]  }
   0x1   :  { %13 = vsyncpa [#allocation6], 0 }
   0x2   :  { %14 = vsyncpa [#allocation9], 0 }
   0x3   :  { %15 = vsyncpa [#allocation4], 0  ;;  %s1826_s24 = smov [#allocation5]  }
   0x4   :  { %s31_s25 = sshll.u32 %s1826_s24, 4  ;;  %s32_s25 = int_to_ptr.vmem [resolvable:$true] %s31_s25 }
   0x5   :  { %s1726_s26 = scalar_lea.vmem %s32_s25, 256  ;;  %p1731_p1 = scmp.lt.s32.totalorder %s32_s25, %s32_s25 }
   0x6   :  { %p1727_p0 = scmp.ne.s32.totalorder %s32_s25, %s1726_s26  ;;  %p1732_p2 = scmp.lt.s32.totalorder %s1726_s26, %s1726_s26 }
   0x8   :  { %p1733_p3 = por %p1732_p2, %p1731_p1 }
   0xa   :  { %p1734_p4 = pnand %p1733_p3, %p1727_p0 }
   0xc   :  { %1737 = shalt.err (!%p1734_p4)
}
   0xd   :  { %s1827_s27 = smov 64   ;;  %s1828_s28 = smov 4  }
   0xe   :  { %37 = dma.hbm_to_vmem [thread:$0]  %s2226_s1, 256, %s32_s25, [#allocation6], %s1827_s27, %s1827_s27, %s1828_s28  }
   0xf   :  { %s1829_s8 = smov [#allocation2]   ;;  %s1830_s10 = smov [#allocation7]  }
  0x10   :  { %s22_s9 = sshll.u32 %s1829_s8, 4  ;;  %s43_s11 = sshll.u32 %s1830_s10, 4  ;;  %s23_s9 = int_to_ptr.vmem [resolvable:$true] %s22_s9  ;;  %s44_s11 = int_to_ptr.vmem [resolvable:$true] %s43_s11 }
  0x11   :  { %s1746_s12 = scalar_lea.vmem %s23_s9, 64  ;;  %p1751_p6 = scmp.lt.s32.totalorder %s23_s9, %s23_s9 }
  0x12   :  { %p1747_p5 = scmp.ne.s32.totalorder %s23_s9, %s1746_s12  ;;  %p1752_p7 = scmp.lt.s32.totalorder %s1746_s12, %s1746_s12 }
  0x14   :  { %p1753_p8 = por %p1752_p7, %p1751_p6 }
  0x16   :  { %p1754_p9 = pnand %p1753_p8, %p1747_p5 }
  0x18   :  { %1757 = shalt.err (!%p1754_p9)
}
  0x19   :  { %25 = dma.hbm_to_vmem [thread:$0]  %s2225_s0, 64, %s23_s9, [#allocation3]  }
  0x1a   :  { %s1766_s15 = scalar_lea.vmem %s44_s11, 256  ;;  %p1771_p11 = scmp.lt.s32.totalorder %s44_s11, %s44_s11 }
  0x1b   :  { %p1767_p10 = scmp.ne.s32.totalorder %s44_s11, %s1766_s15  ;;  %p1772_p12 = scmp.lt.s32.totalorder %s1766_s15, %s1766_s15 }
  0x1d   :  { %p1773_p13 = por %p1772_p12, %p1771_p11 }
  0x1f   :  { %p1774_p0 = pnand %p1773_p13, %p1767_p10 }
  0x21   :  { %1777 = shalt.err (!%p1774_p0)
}
  0x22   :  { %49 = dma.hbm_to_vmem [thread:$0]  %s2227_s2, 256, %s44_s11, [#allocation6], %s1827_s27, %s1827_s27, %s1828_s28  }
  0x23   :  { %s1831_s17 = smov [#allocation8]  }
  0x24   :  { %s55_s18 = sshll.u32 %s1831_s17, 4  ;;  %s56_s18 = int_to_ptr.vmem [resolvable:$true] %s55_s18 }
  0x25   :  { %s1786_s19 = scalar_lea.vmem %s56_s18, 256  ;;  %p1791_p2 = scmp.lt.s32.totalorder %s56_s18, %s56_s18 }
  0x26   :  { %p1787_p1 = scmp.ne.s32.totalorder %s56_s18, %s1786_s19  ;;  %p1792_p3 = scmp.lt.s32.totalorder %s1786_s19, %s1786_s19 }
  0x28   :  { %p1793_p4 = por %p1792_p3, %p1791_p2 }
  0x2a   :  { %p1794_p5 = pnand %p1793_p4, %p1787_p1 }
  0x2c   :  { %1797 = shalt.err (!%p1794_p5)
}
  0x2d   :  { %61 = dma.hbm_to_vmem [thread:$0]  %s2228_s3, 256, %s56_s18, [#allocation9], %s1827_s27, %s1827_s27, %s1828_s28  }
  0x2e   :  { %1818 = dma.done.wait [#allocation3], 64  }
  0x2f   :  { %1819 = vsyncadd [#allocation3], 4294967232 }
  0x30   :  { %1820 = dma.done.wait [#allocation6], 512  }
  0x31   :  { %1821 = vsyncadd [#allocation6], 4294966784 }
  0x32   :  { %1822 = dma.done.wait [#allocation9], 256  }
  0x33   :  { %1823 = vsyncadd [#allocation9], 4294967040  ;;  %v1832_v0 = vmov 0.0   ;;  %vm1833_vm0 = vmmov 0   ;;  %v1600_v1 = vld [vmem:[#allocation5 + $0x8] sm:$0xff]   ;;  %v1905_v2 = vld [vmem:[#allocation7 + $0x8] sm:$0xff]   ;;  %v96_v8 = vlaneseq }
  0x34   :  { %1468 = vmatprep.subr.bf16.mxu0 %v1832_v0  ;;  %1476 = vmatprep.subr.bf16.mxu1 %v1832_v0  ;;  %v1602_v3 = vld [vmem:[#allocation5] sm:$0xff]   ;;  %v1909_v4 = vld [vmem:[#allocation7] sm:$0xff]   ;;  %v157_v5 = vld [vmem:[%s2230_s5] sm:$0x1]  ;;  %vm113_vm1 = vcmask 261120   ;;  %s1834_s22 = smov 32  }
  0x35   :  { %1472 = vmatprep.mubr.msk.bf16.mxu0 %vm1833_vm0, %v1832_v0  ;;  %1480 = vmatprep.mubr.msk.bf16.mxu1 %vm1833_vm0, %v1832_v0  ;;  %v90_v6 = vld [vmem:[#allocation2] sm:$0xf]  ;;  %v159_v7 = vpack.c.bf16 %v157_v5, %v157_v5  ;;  %v1933_v9 = vshrl.u32 %v96_v8, 7  ;;  %vm2134_vm2 = vcmp.lt.s32.totalorder %v96_v8, 32  ;;  %vm2139_vm3 = vcmp.ge.s32.totalorder %v96_v8, 32  ;;  %s1837_s24 = smov [#allocation10]  }
  0x36   :  { %1469 = vmatpush3.bf16.msra.mxu0 %v1600_v1  ;;  %1477 = vmatpush3.bf16.msra.mxu1 %v1905_v2  ;;  %v1939_v11 = vld [vmem:[%s2229_s4] sm:$0x1]  ;;  %vm2144_vm4 = vcmp.lt.s32.totalorder %v96_v8, 64  ;;  %vm2149_vm5 = vcmp.ge.s32.totalorder %v96_v8, 64  ;;  %vm2154_vm6 = vcmp.lt.s32.totalorder %v96_v8, 96  ;;  %vm2169_vm9 = vcmp.ge.s32.totalorder %v96_v8, 96 }
  0x37   :  { %1470 = vmatprep.subr.bf16.mxu0 %v1832_v0  ;;  %1478 = vmatprep.subr.bf16.mxu1 %v1832_v0  ;;  %v98_v10 = vsub.s32 0, %v1933_v9  ;;  %v1394_v24 = vld [vmem:[%s2231_s6] ss:$0 sm:$0xff]  ;;  %s1836_s6 = smov 96   ;;  %vm858_vm7 = vmand %vm2139_vm3, %vm2144_vm4  ;;  %vm2174_vm10 = vcmp.lt.s32.totalorder %v96_v8, 128  ;;  %s1376_s25 = sshll.u32 %s1837_s24, 4  ;;  %s1377_s25 = int_to_ptr.vmem [resolvable:$true] %s1376_s25 }
  0x38   :  { %vm933_vm8 = vmand %vm2149_vm5, %vm2154_vm6  ;;  %s1798_s26 = scalar_lea.vmem %s1377_s25, 32  ;;  %p1803_p7 = scmp.lt.s32.totalorder %s1377_s25, %s1377_s25 }
  0x39   :  { %v99_v12 = vrot.slane %v1939_v11, %v98_v10  ;;  %vm1026_vm11 = vmand %vm2169_vm9, %vm2174_vm10  ;;  %p1799_p6 = scmp.ne.s32.totalorder %s1377_s25, %s1798_s26  ;;  %p1804_p8 = scmp.lt.s32.totalorder %s1798_s26, %s1798_s26 }
  0x3a   :  { %1471 = vmatpush3.bf16.msra.mxu0 %v1602_v3  ;;  %1479 = vmatpush3.bf16.msra.mxu1 %v1909_v4 }
  0x3b   :  { %1484 = vmatprep.subr.bf16.mxu0 %v1832_v0  ;;  %1492 = vmatprep.subr.bf16.mxu1 %v1832_v0  ;;  %p1805_p9 = por %p1804_p8, %p1803_p7 }
  0x3d   :  { %1473 = vmatmul.mubr.msk.bf16.vlgmr.msra.gmra.mxu0 %vm113_vm1, %v90_v6  ;;  %1481 = vmatmul.mubr.msk.bf16.vlgmr.msra.gmra.mxu1 %vm113_vm1, %v159_v7  ;;  %p1806_p10 = pnand %p1805_p9, %p1799_p6 }
  0x3e   :  { %1485 = vmatpush3.bf16.msra.mxu0 %v1905_v2  ;;  %1488 = vmatprep.mubr.msk.bf16.mxu0 %vm1833_vm0, %v1832_v0 }
  0x3f   :  { %1486 = vmatprep.subr.bf16.mxu0 %v1832_v0  ;;  %1493 = vmatpush3.bf16.msra.mxu1 %v1905_v2 }
  0x40   :  { %1496 = vmatprep.mubr.msk.bf16.mxu1 %vm1833_vm0, %v1832_v0  ;;  %1494 = vmatprep.subr.bf16.mxu1 %v1832_v0 }
  0x42   :  { %1487 = vmatpush3.bf16.msra.mxu0 %v1909_v4 }
  0x43   :  { %1500 = vmatprep.subr.bf16.mxu0 %v1832_v0  ;;  %1495 = vmatpush3.bf16.msra.mxu1 %v1909_v4 }
  0x44   :  { %1508 = vmatprep.subr.bf16.mxu1 %v1832_v0 }
  0xfd   :  { %v151_v13 = vpop.f32.mrf.mxu0  ;;  %v209_v15 = vpop.f32.mrf.mxu1 }
  0xfe   :  { %v1942_v14 = vadd.f32 %v151_v13, %v99_v12 }
  0xff   :  { %v1474_v16 = vpop.f32.mrf.mxu0  ;;  %v1482_v18 = vpop.f32.mrf.mxu1 }
 0x100   :  { %v215_v17 = vadd.f32 %v209_v15, %v1942_v14 }
 0x101   :  { %v154_v19 = vpop.f32.mrf.mxu0  ;;  %v212_v20 = vpop.f32.mrf.mxu1 }
 0x102   :  { %1606 = vtanh.f32 %v215_v17  ;;  %v1393_v25 = vmul.f32 -1.442695, %v215_v17 }
 0x103   :  { %v1475_v21 = vpop.f32.mrf.mxu0  ;;  %v1483_v22 = vpop.f32.mrf.mxu1 }
 0x104   :  { %1608 = vpow2.f32 %v1393_v25 }
 0x10f   :  { %v1607_v23 = vpop.eup %1606 }
 0x110   :  { %233 = vrot.lane.b32.xlu0 %v1607_v23, %s1834_s22 }
 0x111   :  { %v1609_v26 = vpop.eup %1608 }
 0x112   :  { %v219_v27 = vadd.f32 1.0, %v1609_v26 }
 0x114   :  { %228 = vrot.lane.b32.xlu0 %v1394_v24, %s1834_s22  ;;  %1610 = vrcp.f32 %v219_v27 }
 0x121   :  { %v1611_v28 = vpop.eup %1610 }
 0x182   :  { %v234_v29 = vpop.permute.xlu0 %233 }
 0x183   :  { %v236_v30 = vmul.f32 %v1611_v28, %v234_v29 }
 0x185   :  { %238 = vrot.lane.b32.xlu1 %v236_v30, %s1834_s22 }
 0x186   :  { %v229_v31 = vpop.permute.xlu0 %228 }
 0x187   :  { %v231_v32 = vmul.f32 %v1611_v28, %v229_v31 }
 0x1f7   :  { %v239_v33 = vpop.permute.xlu1 %238 }
 0x1f8   :  { %v241_v34 = vadd.f32 %v239_v33, %v231_v32 }
 0x1fa   :  { %1612 = vtanh.f32 %v241_v34  ;;  %v307_v53 = vrot.slane %v241_v34, 7 }
 0x207   :  { %v1613_v35 = vpop.eup %1612 }
 0x208   :  { %244 = vrot.lane.b32.xlu1 %v1613_v35, %s1834_s22 }
 0x27a   :  { %v245_v36 = vpop.permute.xlu1 %244 }
 0x27b   :  { %v247_v37 = vmul.f32 %v1611_v28, %v245_v36 }
 0x27d   :  { %v248_v38 = vpack.c.bf16 %v247_v37, %v247_v37 }
 0x27f   :  { %250 = vrot.lane.b32.xlu0 %v248_v38, %s1827_s27 }
 0x2f1   :  { %v251_v39 = vpop.permute.xlu0 %250 }
 0x2f2   :  { %1489 = vmatmul.mubr.msk.bf16.vlgmr.msra.gmra.mxu0 %vm113_vm1, %v251_v39 }
 0x2f3   :  { %1501 = vmatpush3.bf16.msra.mxu0 %v1905_v2  ;;  %1504 = vmatprep.mubr.msk.bf16.mxu0 %vm1833_vm0, %v1832_v0 }
 0x2f4   :  { %1502 = vmatprep.subr.bf16.mxu0 %v1832_v0 }
 0x2f7   :  { %1503 = vmatpush3.bf16.msra.mxu0 %v1909_v4 }
 0x2f8   :  { %1516 = vmatprep.subr.bf16.mxu0 %v1832_v0 }
 0x3b2   :  { %v289_v40 = vpop.f32.mrf.mxu0 }
 0x3b3   :  { %v296_v41 = vrot.slane %v289_v40, 7 }
 0x3b4   :  { %v1490_v42 = vpop.f32.mrf.mxu0 }
 0x3b5   :  { %v298_v43 = vadd.f32 %v296_v41, %v1942_v14 }
 0x3b6   :  { %v292_v44 = vpop.f32.mrf.mxu0 }
 0x3b7   :  { %1614 = vtanh.f32 %v298_v43  ;;  %v1396_v47 = vmul.f32 -1.442695, %v298_v43 }
 0x3b8   :  { %v1491_v45 = vpop.f32.mrf.mxu0 }
 0x3b9   :  { %1616 = vpow2.f32 %v1396_v47 }
 0x3c4   :  { %v1615_v46 = vpop.eup %1614 }
 0x3c5   :  { %311 = vrot.lane.b32.xlu1 %v1615_v46, %s1834_s22 }
 0x3c6   :  { %v1617_v48 = vpop.eup %1616 }
 0x3c7   :  { %v302_v49 = vadd.f32 1.0, %v1617_v48 }
 0x3c9   :  { %1618 = vrcp.f32 %v302_v49 }
 0x3d6   :  { %v1619_v50 = vpop.eup %1618 }
 0x3d7   :  { %v309_v54 = vmul.f32 %v1619_v50, %v307_v53 }
 0x437   :  { %v312_v51 = vpop.permute.xlu1 %311 }
 0x438   :  { %v314_v52 = vmul.f32 %v1619_v50, %v312_v51 }
 0x43a   :  { %316 = vrot.lane.b32.xlu0 %v314_v52, %s1834_s22 }
 0x4ac   :  { %v317_v55 = vpop.permute.xlu0 %316 }
 0x4ad   :  { %v319_v56 = vadd.f32 %v317_v55, %v309_v54 }
 0x4af   :  { %1620 = vtanh.f32 %v319_v56  ;;  %v387_v19 = vrot.slane %v319_v56, 7 }
 0x4bc   :  { %v1621_v57 = vpop.eup %1620 }
 0x4bd   :  { %322 = vrot.lane.b32.xlu1 %v1621_v57, %s1834_s22 }
 0x52f   :  { %v323_v58 = vpop.permute.xlu1 %322 }
 0x530   :  { %v325_v59 = vmul.f32 %v1619_v50, %v323_v58 }
 0x532   :  { %v326_v60 = vpack.c.bf16 %v325_v59, %v325_v59 }
 0x534   :  { %v328_v61 = vshrl.u32 %v326_v60, 16 }
 0x536   :  { %330 = vrot.lane.b32.xlu0 %v328_v61, %s1827_s27 }
 0x5a8   :  { %v331_v62 = vpop.permute.xlu0 %330 }
 0x5a9   :  { %1497 = vmatmul.mubr.msk.bf16.vlgmr.msra.gmra.mxu1 %vm113_vm1, %v331_v62 }
 0x5aa   :  { %1509 = vmatpush3.bf16.msra.mxu1 %v1905_v2  ;;  %1512 = vmatprep.mubr.msk.bf16.mxu1 %vm1833_vm0, %v1832_v0 }
 0x5ab   :  { %1510 = vmatprep.subr.bf16.mxu1 %v1832_v0 }
 0x5ae   :  { %1511 = vmatpush3.bf16.msra.mxu1 %v1909_v4 }
 0x5af   :  { %1524 = vmatprep.subr.bf16.mxu1 %v1832_v0 }
 0x669   :  { %v369_v63 = vpop.f32.mrf.mxu1 }
 0x66a   :  { %v376_v1 = vrot.slane %v369_v63, 6 }
 0x66b   :  { %v1498_v3 = vpop.f32.mrf.mxu1 }
 0x66c   :  { %v378_v5 = vadd.f32 %v376_v1, %v1942_v14 }
 0x66d   :  { %v372_v6 = vpop.f32.mrf.mxu1 }
 0x66e   :  { %1622 = vtanh.f32 %v378_v5  ;;  %v1398_v12 = vmul.f32 -1.442695, %v378_v5 }
 0x66f   :  { %v1499_v7 = vpop.f32.mrf.mxu1 }
 0x670   :  { %1624 = vpow2.f32 %v1398_v12 }
 0x67b   :  { %v1623_v10 = vpop.eup %1622 }
 0x67c   :  { %391 = vrot.lane.b32.xlu1 %v1623_v10, %s1834_s22 }
 0x67d   :  { %v1625_v13 = vpop.eup %1624 }
 0x67e   :  { %v382_v15 = vadd.f32 1.0, %v1625_v13 }
 0x680   :  { %1626 = vrcp.f32 %v382_v15 }
 0x68d   :  { %v1627_v16 = vpop.eup %1626 }
 0x68e   :  { %v389_v20 = vmul.f32 %v1627_v16, %v387_v19 }
 0x6ee   :  { %v392_v17 = vpop.permute.xlu1 %391 }
 0x6ef   :  { %v394_v18 = vmul.f32 %v1627_v16, %v392_v17 }
 0x6f1   :  { %396 = vrot.lane.b32.xlu0 %v394_v18, %s1834_s22 }
 0x763   :  { %v397_v21 = vpop.permute.xlu0 %396 }
 0x764   :  { %v399_v22 = vadd.f32 %v397_v21, %v389_v20 }
 0x766   :  { %1628 = vtanh.f32 %v399_v22  ;;  %v466_v42 = vrot.slane %v399_v22, 7 }
 0x773   :  { %v1629_v23 = vpop.eup %1628 }
 0x774   :  { %402 = vrot.lane.b32.xlu1 %v1629_v23, %s1834_s22 }
 0x7e6   :  { %v403_v24 = vpop.permute.xlu1 %402 }
 0x7e7   :  { %v405_v25 = vmul.f32 %v1627_v16, %v403_v24 }
 0x7e9   :  { %v406_v26 = vpack.c.bf16 %v405_v25, %v405_v25 }
 0x7eb   :  { %v408_v27 = vrot.slane %v406_v26, 1 }
 0x7ed   :  { %409 = vrot.lane.b32.xlu0 %v408_v27, %s1827_s27 }
 0x85f   :  { %v410_v28 = vpop.permute.xlu0 %409 }
 0x860   :  { %1505 = vmatmul.mubr.msk.bf16.vlgmr.msra.gmra.mxu0 %vm113_vm1, %v410_v28 }
 0x861   :  { %1517 = vmatpush3.bf16.msra.mxu0 %v1905_v2  ;;  %1520 = vmatprep.mubr.msk.bf16.mxu0 %vm1833_vm0, %v1832_v0 }
 0x862   :  { %1518 = vmatprep.subr.bf16.mxu0 %v1832_v0 }
 0x865   :  { %1519 = vmatpush3.bf16.msra.mxu0 %v1909_v4 }
 0x866   :  { %1532 = vmatprep.subr.bf16.mxu0 %v1832_v0 }
 0x920   :  { %v448_v29 = vpop.f32.mrf.mxu0 }
 0x921   :  { %v455_v30 = vrot.slane %v448_v29, 5 }
 0x922   :  { %v1506_v31 = vpop.f32.mrf.mxu0 }
 0x923   :  { %v457_v32 = vadd.f32 %v455_v30, %v1942_v14 }
 0x924   :  { %v451_v33 = vpop.f32.mrf.mxu0 }
 0x925   :  { %1630 = vtanh.f32 %v457_v32  ;;  %v1400_v36 = vmul.f32 -1.442695, %v457_v32 }
 0x926   :  { %v1507_v34 = vpop.f32.mrf.mxu0 }
 0x927   :  { %1632 = vpow2.f32 %v1400_v36 }
 0x932   :  { %v1631_v35 = vpop.eup %1630 }
 0x933   :  { %470 = vrot.lane.b32.xlu1 %v1631_v35, %s1834_s22 }
 0x934   :  { %v1633_v37 = vpop.eup %1632 }
 0x935   :  { %v461_v38 = vadd.f32 1.0, %v1633_v37 }
 0x937   :  { %1634 = vrcp.f32 %v461_v38 }
 0x944   :  { %v1635_v39 = vpop.eup %1634 }
 0x945   :  { %v468_v43 = vmul.f32 %v1635_v39, %v466_v42 }
 0x9a5   :  { %v471_v40 = vpop.permute.xlu1 %470 }
 0x9a6   :  { %v473_v41 = vmul.f32 %v1635_v39, %v471_v40 }
 0x9a8   :  { %475 = vrot.lane.b32.xlu0 %v473_v41, %s1834_s22 }
 0xa1a   :  { %v476_v44 = vpop.permute.xlu0 %475 }
 0xa1b   :  { %v478_v45 = vadd.f32 %v476_v44, %v468_v43 }
 0xa1d   :  { %1636 = vtanh.f32 %v478_v45  ;;  %v547_v1 = vrot.slane %v478_v45, 7 }
 0xa2a   :  { %v1637_v46 = vpop.eup %1636 }
 0xa2b   :  { %481 = vrot.lane.b32.xlu1 %v1637_v46, %s1834_s22 }
 0xa9d   :  { %v482_v47 = vpop.permute.xlu1 %481 }
 0xa9e   :  { %v484_v48 = vmul.f32 %v1635_v39, %v482_v47 }
 0xaa0   :  { %v485_v49 = vpack.c.bf16 %v484_v48, %v484_v48 }
 0xaa2   :  { %v487_v50 = vshrl.u32 %v485_v49, 16 }
 0xaa4   :  { %v489_v51 = vrot.slane %v487_v50, 1 }
 0xaa6   :  { %490 = vrot.lane.b32.xlu0 %v489_v51, %s1827_s27 }
 0xb18   :  { %v491_v52 = vpop.permute.xlu0 %490 }
 0xb19   :  { %1513 = vmatmul.mubr.msk.bf16.vlgmr.msra.gmra.mxu1 %vm113_vm1, %v491_v52 }
 0xb1a   :  { %1525 = vmatpush3.bf16.msra.mxu1 %v1905_v2  ;;  %1528 = vmatprep.mubr.msk.bf16.mxu1 %vm1833_vm0, %v1832_v0 }
 0xb1b   :  { %1526 = vmatprep.subr.bf16.mxu1 %v1832_v0 }
 0xb1e   :  { %1527 = vmatpush3.bf16.msra.mxu1 %v1909_v4 }
 0xb1f   :  { %1540 = vmatprep.subr.bf16.mxu1 %v1832_v0 }
 0xbd9   :  { %v529_v53 = vpop.f32.mrf.mxu1 }
 0xbda   :  { %v536_v54 = vrot.slane %v529_v53, 4 }
 0xbdb   :  { %v1514_v55 = vpop.f32.mrf.mxu1 }
 0xbdc   :  { %v538_v56 = vadd.f32 %v536_v54, %v1942_v14 }
 0xbdd   :  { %v532_v57 = vpop.f32.mrf.mxu1 }
 0xbde   :  { %1638 = vtanh.f32 %v538_v56  ;;  %v1402_v2 = vmul.f32 -1.442695, %v538_v56  ;;  %v2015_v57 = vld [vmem:[#allocation8 + $0x8] sm:$0xff]  }
 0xbdf   :  { %v1515_v58 = vpop.f32.mrf.mxu1 }
 0xbe0   :  { %1640 = vpow2.f32 %v1402_v2  ;;  %v2018_v58 = vld [vmem:[#allocation8] sm:$0xff]  }
 0xbeb   :  { %v1639_v59 = vpop.eup %1638 }
 0xbec   :  { %551 = vrot.lane.b32.xlu1 %v1639_v59, %s1834_s22 }
 0xbed   :  { %v1641_v60 = vpop.eup %1640 }
 0xbee   :  { %v542_v61 = vadd.f32 1.0, %v1641_v60 }
 0xbf0   :  { %1642 = vrcp.f32 %v542_v61 }
 0xbfd   :  { %v1643_v62 = vpop.eup %1642 }
 0xbfe   :  { %v549_v3 = vmul.f32 %v1643_v62, %v547_v1 }
 0xc5e   :  { %v552_v4 = vpop.permute.xlu1 %551 }
 0xc5f   :  { %v554_v63 = vmul.f32 %v1643_v62, %v552_v4 }
 0xc61   :  { %556 = vrot.lane.b32.xlu0 %v554_v63, %s1834_s22 }
 0xcd3   :  { %v557_v5 = vpop.permute.xlu0 %556 }
 0xcd4   :  { %v559_v6 = vadd.f32 %v557_v5, %v549_v3 }
 0xcd6   :  { %1644 = vtanh.f32 %v559_v6  ;;  %v626_v30 = vrot.slane %v559_v6, 7 }
 0xce3   :  { %v1645_v7 = vpop.eup %1644 }
 0xce4   :  { %562 = vrot.lane.b32.xlu1 %v1645_v7, %s1834_s22 }
 0xd56   :  { %v563_v10 = vpop.permute.xlu1 %562 }
 0xd57   :  { %v565_v12 = vmul.f32 %v1643_v62, %v563_v10 }
 0xd59   :  { %v566_v13 = vpack.c.bf16 %v565_v12, %v565_v12 }
 0xd5b   :  { %v568_v15 = vrot.slane %v566_v13, 2 }
 0xd5d   :  { %569 = vrot.lane.b32.xlu0 %v568_v15, %s1827_s27 }
 0xdcf   :  { %v570_v16 = vpop.permute.xlu0 %569 }
 0xdd0   :  { %1521 = vmatmul.mubr.msk.bf16.vlgmr.msra.gmra.mxu0 %vm113_vm1, %v570_v16 }
 0xdd1   :  { %1536 = vmatprep.mubr.msk.bf16.mxu0 %vm1833_vm0, %v1832_v0  ;;  %1533 = vmatpush3.bf16.msra.mxu0 %v2015_v57 }
 0xdd2   :  { %1534 = vmatprep.subr.bf16.mxu0 %v1832_v0 }
 0xdd5   :  { %1535 = vmatpush3.bf16.msra.mxu0 %v2018_v58 }
 0xdd6   :  { %1548 = vmatprep.subr.bf16.mxu0 %v1832_v0 }
 0xe90   :  { %v608_v17 = vpop.f32.mrf.mxu0 }
 0xe91   :  { %v615_v18 = vrot.slane %v608_v17, 3 }
 0xe92   :  { %v1522_v19 = vpop.f32.mrf.mxu0 }
 0xe93   :  { %v617_v20 = vadd.f32 %v615_v18, %v1942_v14 }
 0xe94   :  { %v611_v21 = vpop.f32.mrf.mxu0 }
 0xe95   :  { %1646 = vtanh.f32 %v617_v20  ;;  %v1404_v24 = vmul.f32 -1.442695, %v617_v20 }
 0xe96   :  { %v1523_v22 = vpop.f32.mrf.mxu0 }
 0xe97   :  { %1648 = vpow2.f32 %v1404_v24 }
 0xea2   :  { %v1647_v23 = vpop.eup %1646 }
 0xea3   :  { %630 = vrot.lane.b32.xlu1 %v1647_v23, %s1834_s22 }
 0xea4   :  { %v1649_v25 = vpop.eup %1648 }
 0xea5   :  { %v621_v26 = vadd.f32 1.0, %v1649_v25 }
 0xea7   :  { %1650 = vrcp.f32 %v621_v26 }
 0xeb4   :  { %v1651_v27 = vpop.eup %1650 }
 0xeb5   :  { %v628_v31 = vmul.f32 %v1651_v27, %v626_v30 }
 0xf15   :  { %v631_v28 = vpop.permute.xlu1 %630 }
 0xf16   :  { %v633_v29 = vmul.f32 %v1651_v27, %v631_v28 }
 0xf18   :  { %635 = vrot.lane.b32.xlu0 %v633_v29, %s1834_s22 }
 0xf8a   :  { %v636_v32 = vpop.permute.xlu0 %635 }
 0xf8b   :  { %v638_v33 = vadd.f32 %v636_v32, %v628_v31 }
 0xf8d   :  { %1652 = vtanh.f32 %v638_v33  ;;  %v707_v54 = vrot.slane %v638_v33, 7 }
 0xf9a   :  { %v1653_v34 = vpop.eup %1652 }
 0xf9b   :  { %641 = vrot.lane.b32.xlu1 %v1653_v34, %s1834_s22 }
0x100d   :  { %v642_v35 = vpop.permute.xlu1 %641 }
0x100e   :  { %v644_v36 = vmul.f32 %v1651_v27, %v642_v35 }
0x1010   :  { %v645_v37 = vpack.c.bf16 %v644_v36, %v644_v36 }
0x1012   :  { %v647_v38 = vshrl.u32 %v645_v37, 16 }
0x1014   :  { %v649_v39 = vrot.slane %v647_v38, 2 }
0x1016   :  { %650 = vrot.lane.b32.xlu0 %v649_v39, %s1827_s27 }
0x1088   :  { %v651_v40 = vpop.permute.xlu0 %650 }
0x1089   :  { %1529 = vmatmul.mubr.msk.bf16.vlgmr.msra.gmra.mxu1 %vm113_vm1, %v651_v40 }
0x108a   :  { %1544 = vmatprep.mubr.msk.bf16.mxu1 %vm1833_vm0, %v1832_v0  ;;  %1541 = vmatpush3.bf16.msra.mxu1 %v2015_v57 }
0x108b   :  { %1542 = vmatprep.subr.bf16.mxu1 %v1832_v0 }
0x108e   :  { %1543 = vmatpush3.bf16.msra.mxu1 %v2018_v58 }
0x108f   :  { %1556 = vmatprep.subr.bf16.mxu1 %v1832_v0 }
0x1149   :  { %v689_v41 = vpop.f32.mrf.mxu1 }
0x114a   :  { %v696_v42 = vrot.slane %v689_v41, 2 }
0x114b   :  { %v1530_v43 = vpop.f32.mrf.mxu1 }
0x114c   :  { %v698_v44 = vadd.f32 %v696_v42, %v1942_v14 }
0x114d   :  { %v692_v45 = vpop.f32.mrf.mxu1 }
0x114e   :  { %1654 = vtanh.f32 %v698_v44  ;;  %v1406_v48 = vmul.f32 -1.442695, %v698_v44 }
0x114f   :  { %v1531_v46 = vpop.f32.mrf.mxu1 }
0x1150   :  { %1656 = vpow2.f32 %v1406_v48 }
0x115b   :  { %v1655_v47 = vpop.eup %1654 }
0x115c   :  { %711 = vrot.lane.b32.xlu1 %v1655_v47, %s1834_s22 }
0x115d   :  { %v1657_v49 = vpop.eup %1656 }
0x115e   :  { %v702_v50 = vadd.f32 1.0, %v1657_v49 }
0x1160   :  { %1658 = vrcp.f32 %v702_v50 }
0x116d   :  { %v1659_v51 = vpop.eup %1658 }
0x116e   :  { %v709_v55 = vmul.f32 %v1659_v51, %v707_v54 }
0x11ce   :  { %v712_v52 = vpop.permute.xlu1 %711 }
0x11cf   :  { %v714_v53 = vmul.f32 %v1659_v51, %v712_v52 }
0x11d1   :  { %716 = vrot.lane.b32.xlu0 %v714_v53, %s1834_s22 }
0x1243   :  { %v717_v56 = vpop.permute.xlu0 %716 }
0x1244   :  { %v719_v14 = vadd.f32 %v717_v56, %v709_v55 }
0x1246   :  { %1660 = vtanh.f32 %v719_v14  ;;  %v819_v18 = vrot.slane %v719_v14, 6 }
0x1253   :  { %v1661_v59 = vpop.eup %1660 }
0x1254   :  { %722 = vrot.lane.b32.xlu1 %v1661_v59, %s1834_s22 }
0x12c6   :  { %v723_v2 = vpop.permute.xlu1 %722 }
0x12c7   :  { %v2028_v60 = vmul.f32 %v1659_v51, %v723_v2 }
0x12c9   :  { %v751_v61 = vpack.c.bf16 %v2028_v60, %v2028_v60 }
0x12cb   :  { %v753_v62 = vrot.slane %v751_v61, 3 }
0x12cd   :  { %754 = vrot.lane.b32.xlu0 %v753_v62, %s1827_s27 }
0x133f   :  { %v755_v4 = vpop.permute.xlu0 %754 }
0x1340   :  { %1537 = vmatmul.mubr.msk.bf16.vlgmr.msra.gmra.mxu0 %vm113_vm1, %v755_v4 }
0x1341   :  { %1549 = vmatpush3.bf16.msra.mxu0 %v2015_v57  ;;  %1552 = vmatprep.mubr.msk.bf16.mxu0 %vm1833_vm0, %v1832_v0 }
0x1342   :  { %1550 = vmatprep.subr.bf16.mxu0 %v1832_v0 }
0x1345   :  { %1551 = vmatpush3.bf16.msra.mxu0 %v2018_v58 }
0x1346   :  { %1564 = vmatprep.subr.bf16.mxu0 %v1832_v0 }
0x1400   :  { %v805_v63 = vpop.f32.mrf.mxu0 }
0x1401   :  { %v806_v1 = vadd.f32 %v805_v63, %v1939_v11 }
0x1402   :  { %v1538_v3 = vpop.f32.mrf.mxu0 }
0x1403   :  { %1662 = vtanh.f32 %v806_v1  ;;  %v1410_v10 = vmul.f32 -1.442695, %v806_v1 }
0x1404   :  { %v808_v5 = vpop.f32.mrf.mxu0 }
0x1405   :  { %1664 = vpow2.f32 %v1410_v10 }
0x1406   :  { %v1539_v6 = vpop.f32.mrf.mxu0 }
0x1410   :  { %v1663_v7 = vpop.eup %1662 }
0x1411   :  { %823 = vrot.lane.b32.xlu1 %v1663_v7, %s1834_s22 }
0x1412   :  { %v1665_v12 = vpop.eup %1664 }
0x1413   :  { %v814_v13 = vadd.f32 1.0, %v1665_v12 }
0x1415   :  { %1666 = vrcp.f32 %v814_v13 }
0x1422   :  { %v1667_v15 = vpop.eup %1666 }
0x1423   :  { %v821_v19 = vmul.f32 %v1667_v15, %v819_v18 }
0x1483   :  { %v824_v16 = vpop.permute.xlu1 %823 }
0x1484   :  { %v826_v17 = vmul.f32 %v1667_v15, %v824_v16 }
0x1486   :  { %828 = vrot.lane.b32.xlu0 %v826_v17, %s1834_s22 }
0x14f8   :  { %v829_v20 = vpop.permute.xlu0 %828 }
0x14f9   :  { %v831_v21 = vadd.f32 %v829_v20, %v821_v19 }
0x14fb   :  { %1668 = vtanh.f32 %v831_v21 }
0x1508   :  { %v1669_v22 = vpop.eup %1668 }
0x1509   :  { %834 = vrot.lane.b32.xlu1 %v1669_v22, %s1834_s22 }
0x157b   :  { %v835_v23 = vpop.permute.xlu1 %834 }
0x157c   :  { %v2044_v24 = vmul.f32 %v1667_v15, %v835_v23 }
0x157e   :  { %v860_v25 = vpack.c.bf16 %v2044_v24, %v2044_v24 }
0x1580   :  { %862 = vrot.lane.b32.xlu0 %v860_v25, %s1827_s27 }
0x15f2   :  { %v863_v26 = vpop.permute.xlu0 %862 }
0x15f3   :  { %1545 = vmatmul.mubr.msk.bf16.vlgmr.msra.gmra.mxu1 %vm113_vm1, %v863_v26 }
0x15f4   :  { %1557 = vmatpush3.bf16.msra.mxu1 %v2015_v57  ;;  %1560 = vmatprep.mubr.msk.bf16.mxu1 %vm1833_vm0, %v1832_v0 }
0x15f5   :  { %1558 = vmatprep.subr.bf16.mxu1 %v1832_v0 }
0x15f8   :  { %1559 = vmatpush3.bf16.msra.mxu1 %v2018_v58 }
0x15f9   :  { %1572 = vmatprep.subr.bf16.mxu1 %v1832_v0 }
0x16b3   :  { %v901_v27 = vpop.f32.mrf.mxu1 }
0x16b4   :  { %v902_v28 = vadd.f32 %v901_v27, %v1939_v11 }
0x16b5   :  { %v1546_v29 = vpop.f32.mrf.mxu1 }
0x16b6   :  { %1670 = vtanh.f32 %v902_v28  ;;  %v1412_v33 = vmul.f32 -1.442695, %v902_v28 }
0x16b7   :  { %v904_v30 = vpop.f32.mrf.mxu1 }
0x16b8   :  { %1672 = vpow2.f32 %v1412_v33 }
0x16b9   :  { %v1547_v31 = vpop.f32.mrf.mxu1 }
0x16c3   :  { %v1671_v32 = vpop.eup %1670 }
0x16c4   :  { %916 = vrot.lane.b32.xlu1 %v1671_v32, %s1834_s22 }
0x16c5   :  { %v1673_v34 = vpop.eup %1672 }
0x16c6   :  { %v910_v35 = vadd.f32 1.0, %v1673_v34 }
0x16c8   :  { %1674 = vrcp.f32 %v910_v35 }
0x16d5   :  { %v1675_v36 = vpop.eup %1674 }
0x16d6   :  { %v914_v39 = vmul.f32 %v1675_v36, %v831_v21 }
0x1736   :  { %v917_v37 = vpop.permute.xlu1 %916 }
0x1737   :  { %v919_v38 = vmul.f32 %v1675_v36, %v917_v37 }
0x1739   :  { %921 = vrot.lane.b32.xlu0 %v919_v38, %s1834_s22 }
0x17ab   :  { %v922_v40 = vpop.permute.xlu0 %921 }
0x17ac   :  { %v924_v41 = vadd.f32 %v922_v40, %v914_v39 }
0x17ae   :  { %1676 = vtanh.f32 %v924_v41 }
0x17bb   :  { %v1677_v42 = vpop.eup %1676 }
0x17bc   :  { %927 = vrot.lane.b32.xlu1 %v1677_v42, %s1834_s22 }
0x182e   :  { %v928_v43 = vpop.permute.xlu1 %927 }
0x182f   :  { %v2060_v44 = vmul.f32 %v1675_v36, %v928_v43 }
0x1831   :  { %v935_v45 = vpack.c.bf16 %v2060_v44, %v2060_v44 }
0x1833   :  { %937 = vrot.lane.b32.xlu0 %v935_v45, %s1827_s27 }
0x18a5   :  { %v938_v46 = vpop.permute.xlu0 %937 }
0x18a6   :  { %1553 = vmatmul.mubr.msk.bf16.vlgmr.msra.gmra.mxu0 %vm113_vm1, %v938_v46 }
0x18a7   :  { %1565 = vmatpush3.bf16.msra.mxu0 %v2015_v57  ;;  %1568 = vmatprep.mubr.msk.bf16.mxu0 %vm1833_vm0, %v1832_v0 }
0x18a8   :  { %1566 = vmatprep.subr.bf16.mxu0 %v1832_v0 }
0x18ab   :  { %1567 = vmatpush3.bf16.msra.mxu0 %v2018_v58 }
0x18ac   :  { %1580 = vmatprep.subr.bf16.mxu0 %v1832_v0 }
0x1966   :  { %v976_v47 = vpop.f32.mrf.mxu0 }
0x1967   :  { %v977_v48 = vadd.f32 %v976_v47, %v1939_v11 }
0x1968   :  { %v1554_v49 = vpop.f32.mrf.mxu0 }
0x1969   :  { %1678 = vtanh.f32 %v977_v48  ;;  %v1414_v53 = vmul.f32 -1.442695, %v977_v48 }
0x196a   :  { %v979_v50 = vpop.f32.mrf.mxu0 }
0x196b   :  { %1680 = vpow2.f32 %v1414_v53 }
0x196c   :  { %v1555_v51 = vpop.f32.mrf.mxu0 }
0x1976   :  { %v1679_v52 = vpop.eup %1678 }
0x1977   :  { %991 = vrot.lane.b32.xlu1 %v1679_v52, %s1834_s22 }
0x1978   :  { %v1681_v54 = vpop.eup %1680 }
0x1979   :  { %v985_v55 = vadd.f32 1.0, %v1681_v54 }
0x197b   :  { %1682 = vrcp.f32 %v985_v55 }
0x1988   :  { %v1683_v56 = vpop.eup %1682 }
0x1989   :  { %v989_v2 = vmul.f32 %v1683_v56, %v924_v41 }
0x19e9   :  { %v992_v14 = vpop.permute.xlu1 %991 }
0x19ea   :  { %v994_v59 = vmul.f32 %v1683_v56, %v992_v14 }
0x19ec   :  { %996 = vrot.lane.b32.xlu0 %v994_v59, %s1834_s22 }
0x1a5e   :  { %v997_v61 = vpop.permute.xlu0 %996 }
0x1a5f   :  { %v999_v62 = vadd.f32 %v997_v61, %v989_v2 }
0x1a61   :  { %1684 = vtanh.f32 %v999_v62 }
0x1a6e   :  { %v1685_v4 = vpop.eup %1684 }
0x1a6f   :  { %1002 = vrot.lane.b32.xlu1 %v1685_v4, %s1834_s22 }
0x1ae1   :  { %v1003_v63 = vpop.permute.xlu1 %1002 }
0x1ae2   :  { %v2076_v1 = vmul.f32 %v1683_v56, %v1003_v63 }
0x1ae4   :  { %v1028_v3 = vpack.c.bf16 %v2076_v1, %v2076_v1 }
0x1ae6   :  { %1030 = vrot.lane.b32.xlu0 %v1028_v3, %s1827_s27 }
0x1b58   :  { %v1031_v5 = vpop.permute.xlu0 %1030 }
0x1b59   :  { %1561 = vmatmul.mubr.msk.bf16.vlgmr.msra.gmra.mxu1 %vm113_vm1, %v1031_v5 }
0x1b5a   :  { %1573 = vmatpush3.bf16.msra.mxu1 %v2015_v57  ;;  %1576 = vmatprep.mubr.msk.bf16.mxu1 %vm1833_vm0, %v1832_v0 }
0x1b5b   :  { %1574 = vmatprep.subr.bf16.mxu1 %v1832_v0 }
0x1b5e   :  { %1575 = vmatpush3.bf16.msra.mxu1 %v2018_v58 }
0x1c19   :  { %v1069_v6 = vpop.f32.mrf.mxu1 }
0x1c1a   :  { %v1070_v7 = vadd.f32 %v1069_v6, %v1939_v11 }
0x1c1b   :  { %v1562_v10 = vpop.f32.mrf.mxu1 }
0x1c1c   :  { %1686 = vtanh.f32 %v1070_v7  ;;  %v1416_v16 = vmul.f32 -1.442695, %v1070_v7 }
0x1c1d   :  { %v1072_v12 = vpop.f32.mrf.mxu1 }
0x1c1e   :  { %1688 = vpow2.f32 %v1416_v16 }
0x1c1f   :  { %v1563_v13 = vpop.f32.mrf.mxu1 }
0x1c29   :  { %v1687_v15 = vpop.eup %1686 }
0x1c2a   :  { %1084 = vrot.lane.b32.xlu1 %v1687_v15, %s1834_s22 }
0x1c2b   :  { %v1689_v17 = vpop.eup %1688 }
0x1c2c   :  { %v1078_v18 = vadd.f32 1.0, %v1689_v17 }
0x1c2e   :  { %1690 = vrcp.f32 %v1078_v18 }
0x1c3b   :  { %v1691_v19 = vpop.eup %1690 }
0x1c3c   :  { %v1082_v22 = vmul.f32 %v1691_v19, %v999_v62 }
0x1c9c   :  { %v1085_v20 = vpop.permute.xlu1 %1084 }
0x1c9d   :  { %v1087_v21 = vmul.f32 %v1691_v19, %v1085_v20 }
0x1c9f   :  { %1089 = vrot.lane.b32.xlu0 %v1087_v21, %s1834_s22 }
0x1d11   :  { %v1090_v23 = vpop.permute.xlu0 %1089 }
0x1d12   :  { %v1092_v25 = vadd.f32 %v1090_v23, %v1082_v22  ;;  %v1835_v22 = vmov 1966171168  }
0x1d13   :  { %v729_v23 = vunpack.c.l.s4 %v1835_v22 }
0x1d14   :  { %1692 = vtanh.f32 %v1092_v25 }
0x1d21   :  { %v1693_v26 = vpop.eup %1692 }
0x1d22   :  { %1095 = vrot.lane.b32.xlu1 %v1693_v26, %s1834_s22 }
0x1d94   :  { %v1096_v27 = vpop.permute.xlu1 %1095 }
0x1d95   :  { %v2091_v28 = vmul.f32 %v1691_v19, %v1096_v27 }
0x1d97   :  { %v1118_v29 = vpack.c.bf16 %v2091_v28, %v2091_v28 }
0x1d99   :  { %1120 = vrot.lane.b32.xlu0 %v1118_v29, %s1827_s27 }
0x1e0b   :  { %v1121_v30 = vpop.permute.xlu0 %1120 }
0x1e0c   :  { %1569 = vmatmul.mubr.msk.bf16.vlgmr.msra.gmra.mxu0 %vm113_vm1, %v1121_v30 }
0x1e0d   :  { %1581 = vmatpush3.bf16.msra.mxu0 %v2015_v57  ;;  %1584 = vmatprep.mubr.msk.bf16.mxu0 %vm1833_vm0, %v1832_v0 }
0x1e0e   :  { %1582 = vmatprep.subr.bf16.mxu0 %v1832_v0 }
0x1e11   :  { %1583 = vmatpush3.bf16.msra.mxu0 %v2018_v58 }
0x1ecc   :  { %v1159_v31 = vpop.f32.mrf.mxu0 }
0x1ecd   :  { %v1160_v32 = vadd.f32 %v1159_v31, %v1939_v11 }
0x1ece   :  { %v1570_v33 = vpop.f32.mrf.mxu0 }
0x1ecf   :  { %1694 = vtanh.f32 %v1160_v32  ;;  %v1418_v37 = vmul.f32 -1.442695, %v1160_v32 }
0x1ed0   :  { %v1162_v34 = vpop.f32.mrf.mxu0 }
0x1ed1   :  { %1696 = vpow2.f32 %v1418_v37 }
0x1ed2   :  { %v1571_v35 = vpop.f32.mrf.mxu0 }
0x1edc   :  { %v1695_v36 = vpop.eup %1694 }
0x1edd   :  { %1174 = vrot.lane.b32.xlu1 %v1695_v36, %s1834_s22 }
0x1ede   :  { %v1697_v57 = vpop.eup %1696 }
0x1edf   :  { %v1168_v38 = vadd.f32 1.0, %v1697_v57 }
0x1ee1   :  { %1698 = vrcp.f32 %v1168_v38 }
0x1eee   :  { %v1699_v39 = vpop.eup %1698 }
0x1eef   :  { %v1172_v58 = vmul.f32 %v1699_v39, %v1092_v25  ;;  %v730_v25 = vunpack.c.0.s8 %v729_v23 }
0x1ef1   :  { %v733_v26 = vsub.s32 %v730_v25, %v1933_v9 }
0x1ef3   :  { %v845_v33 = vrot.slane %v2044_v24, %v733_v26  ;;  %v1013_v35 = vrot.slane %v2076_v1, %v733_v26 }
0x1ef5   :  { %v852_v36 = vrot.slane %v845_v33, %v733_v26  ;;  %v1020_v9 = vrot.slane %v1013_v35, %v733_v26 }
0x1f4f   :  { %v1175_v40 = vpop.permute.xlu1 %1174 }
0x1f50   :  { %v1177_v0 = vmul.f32 %v1699_v39, %v1175_v40 }
0x1f52   :  { %1179 = vrot.lane.b32.xlu0 %v1177_v0, %s1834_s22 }
0x1fc4   :  { %v1180_v41 = vpop.permute.xlu0 %1179 }
0x1fc5   :  { %v1182_v42 = vadd.f32 %v1180_v41, %v1172_v58 }
0x1fc7   :  { %1700 = vtanh.f32 %v1182_v42 }
0x1fd4   :  { %v1701_v43 = vpop.eup %1700 }
0x1fd5   :  { %1185 = vrot.lane.b32.xlu1 %v1701_v43, %s1834_s22  ;;  %v1106_v43 = vrot.slane %v2091_v28, %v733_v26 }
0x2047   :  { %v1186_v45 = vpop.permute.xlu1 %1185 }
0x2048   :  { %v2106_v46 = vmul.f32 %v1699_v39, %v1186_v45 }
0x204a   :  { %v1208_v47 = vpack.c.bf16 %v2106_v46, %v2106_v46 }
0x204c   :  { %1210 = vrot.lane.b32.xlu0 %v1208_v47, %s1827_s27  ;;  %v1196_v47 = vrot.slane %v2106_v46, %v733_v26 }
0x20be   :  { %v1211_v48 = vpop.permute.xlu0 %1210 }
0x20bf   :  { %1577 = vmatmul.mubr.msk.bf16.vlgmr.msra.gmra.mxu1 %vm113_vm1, %v1211_v48  ;;  %v1203_v48 = vrot.slane %v1196_v47, %v733_v26 }
0x217f   :  { %v1249_v49 = vpop.f32.mrf.mxu1 }
0x2180   :  { %v1250_v50 = vadd.f32 %v1249_v49, %v1939_v11 }
0x2181   :  { %v1578_v51 = vpop.f32.mrf.mxu1 }
0x2182   :  { %1702 = vtanh.f32 %v1250_v50  ;;  %v1420_v55 = vmul.f32 -1.442695, %v1250_v50 }
0x2183   :  { %v1252_v52 = vpop.f32.mrf.mxu1 }
0x2184   :  { %1704 = vpow2.f32 %v1420_v55 }
0x2185   :  { %v1579_v53 = vpop.f32.mrf.mxu1 }
0x218f   :  { %v1703_v54 = vpop.eup %1702 }
0x2190   :  { %1264 = vrot.lane.b32.xlu1 %v1703_v54, %s1834_s22 }
0x2191   :  { %v1705_v56 = vpop.eup %1704 }
0x2192   :  { %v1258_v14 = vadd.f32 1.0, %v1705_v56 }
0x2194   :  { %1706 = vrcp.f32 %v1258_v14 }
0x21a1   :  { %v1707_v59 = vpop.eup %1706 }
0x21a2   :  { %v1262_v62 = vmul.f32 %v1707_v59, %v1182_v42 }
0x2202   :  { %v1265_v2 = vpop.permute.xlu1 %1264 }
0x2203   :  { %v1267_v61 = vmul.f32 %v1707_v59, %v1265_v2 }
0x2205   :  { %1269 = vrot.lane.b32.xlu0 %v1267_v61, %s1834_s22 }
0x2277   :  { %v1270_v4 = vpop.permute.xlu0 %1269 }
0x2278   :  { %v1272_v63 = vadd.f32 %v1270_v4, %v1262_v62 }
0x227a   :  { %1708 = vtanh.f32 %v1272_v63 }
0x2287   :  { %v1709_v3 = vpop.eup %1708 }
0x2288   :  { %1275 = vrot.lane.b32.xlu1 %v1709_v3, %s1834_s22 }
0x22fa   :  { %v1276_v5 = vpop.permute.xlu1 %1275 }
0x22fb   :  { %v2116_v6 = vmul.f32 %v1707_v59, %v1276_v5 }
0x22fd   :  { %v1280_v7 = vpack.c.bf16 %v2116_v6, %v2116_v6 }
0x22ff   :  { %1282 = vrot.lane.b32.xlu0 %v1280_v7, %s1827_s27 }
0x2371   :  { %v1283_v10 = vpop.permute.xlu0 %1282 }
0x2372   :  { %1585 = vmatmul.mubr.msk.bf16.vlgmr.msra.gmra.mxu0 %vm113_vm1, %v1283_v10 }
0x2432   :  { %v1321_v12 = vpop.f32.mrf.mxu0 }
0x2433   :  { %v1322_v13 = vadd.f32 %v1321_v12, %v1939_v11  ;;  %v727_v11 = vcombine.high %v2028_v60, %v2028_v60 }
0x2434   :  { %v1586_v15 = vpop.f32.mrf.mxu0 }
0x2435   :  { %1710 = vtanh.f32 %v1322_v13  ;;  %v1422_v19 = vmul.f32 -1.442695, %v1322_v13  ;;  %v734_v27 = vrot.slane %v727_v11, %v733_v26 }
0x2436   :  { %v1324_v16 = vpop.f32.mrf.mxu0 }
0x2437   :  { %1712 = vpow2.f32 %v1422_v19  ;;  %v741_v32 = vrot.slane %v734_v27, %v733_v26 }
0x2438   :  { %v1587_v17 = vpop.f32.mrf.mxu0 }
0x2439   :  { %v742_v34 = vcombine.high %v741_v32, %v741_v32 }
0x2442   :  { %v1711_v18 = vpop.eup %1710 }
0x2443   :  { %1336 = vrot.lane.b32.xlu1 %v1711_v18, %s1834_s22 }
0x2444   :  { %v1713_v20 = vpop.eup %1712 }
0x2445   :  { %v1330_v21 = vadd.f32 1.0, %v1713_v20 }
0x2447   :  { %1714 = vrcp.f32 %v1330_v21 }
0x2454   :  { %v1715_v29 = vpop.eup %1714 }
0x2455   :  { %v1334_v60 = vmul.f32 %v1715_v29, %v1272_v63 }
0x24b5   :  { %v1337_v30 = vpop.permute.xlu1 %1336 }
0x24b6   :  { %v1339_v31 = vmul.f32 %v1715_v29, %v1337_v30 }
0x24b8   :  { %1341 = vrot.lane.b32.xlu0 %v1339_v31, %s1834_s22 }
0x24bc   :  { %743 = vrot.lane.b32.xlu0 %v742_v34, %s1827_s27 }
0x24c0   :  { %853 = vrot.lane.b32.xlu0 %v852_v36, %s1836_s6 }
0x24c4   :  { %1021 = vrot.lane.b32.xlu0 %v1020_v9, %s1834_s22 }
0x252a   :  { %v1342_v37 = vpop.permute.xlu0 %1341 }
0x252b   :  { %v1344_v57 = vadd.f32 %v1342_v37, %v1334_v60 }
0x252d   :  { %1716 = vtanh.f32 %v1344_v57 }
0x252e   :  { %v744_v39 = vpop.permute.xlu0 %743 }
0x252f   :  { %750 = vst.msk [vmem:[#allocation10] sm:$0x1] %vm2134_vm2, %v744_v39 }
0x2532   :  { %v854_v42 = vpop.permute.xlu0 %853 }
0x2533   :  { %859 = vst.msk [vmem:[#allocation10] sm:$0x1] %vm858_vm7, %v854_v42 }
0x2534   :  { %934 = vst.msk [vmem:[#allocation10] sm:$0x1] %vm933_vm8, %v2060_v44  ;;  %v1113_v44 = vrot.slane %v1106_v43, %v733_v26 }
0x2536   :  { %v1022_v8 = vpop.permute.xlu0 %1021 }
0x2537   :  { %1027 = vst.msk [vmem:[#allocation10] sm:$0x1] %vm1026_vm11, %v1022_v8 }
0x253a   :  { %v1717_v45 = vpop.eup %1716 }
0x253b   :  { %1347 = vrot.lane.b32.xlu1 %v1717_v45, %s1834_s22 }
0x253f   :  { %1114 = vrot.lane.b32.xlu1 %v1113_v44, %s1827_s27 }
0x2543   :  { %1204 = vrot.lane.b32.xlu1 %v1203_v48, %s1836_s6 }
0x25ad   :  { %v1348_v49 = vpop.permute.xlu1 %1347 }
0x25ae   :  { %v1350_v50 = vmul.f32 %v1715_v29, %v1348_v49 }
0x25b0   :  { %v1358_v51 = vrot.slane %v1350_v50, %v733_v26 }
0x25b1   :  { %v1115_v52 = vpop.permute.xlu1 %1114 }
0x25b2   :  { %1117 = vst.msk [vmem:[#allocation10 + $0x1] sm:$0x1] %vm2134_vm2, %v1115_v52  ;;  %v1365_v53 = vrot.slane %v1358_v51, %v733_v26 }
0x25b4   :  { %1366 = vrot.lane.b32.xlu1 %v1365_v53, %s1834_s22 }
0x25b5   :  { %v1205_v28 = vpop.permute.xlu1 %1204 }
0x25b6   :  { %1207 = vst.msk [vmem:[#allocation10 + $0x1] sm:$0x1] %vm858_vm7, %v1205_v28 }
0x25b7   :  { %1279 = vst.msk [vmem:[#allocation10 + $0x1] sm:$0x1] %vm933_vm8, %v2116_v6 }
0x2626   :  { %v1367_v46 = vpop.permute.xlu1 %1366 }
0x2627   :  { %1369 = vst.msk [vmem:[#allocation10 + $0x1] sm:$0x1] %vm1026_vm11, %v1367_v46 }
0x2628   :  { %1809 = shalt.err (!%p1806_p10)
}
0x2629   :  { %1379 = dma.vmem_to_hbm [thread:$0]  %s1377_s25, 32, %s2232_s7, [#allocation4]  }
0x262a   :  { %1824 = dma.done.wait [#allocation4], 32  }
0x262b   :  { %1825 = vsyncadd [#allocation4], 4294967264 }
0x262c   :  { %1383 = vsyncpa [#allocation3], 1 }
0x262d   :  { %1384 = vsyncpa [#allocation6], 1 }
0x262e   :  { %1385 = vsyncpa [#allocation9], 1 }
0x262f   :  { %1386 = vsyncpa [#allocation4], 1 }

</bundles_post_ra>
